<compile_context>
chip_gen: v6e
topology: v6e:2x2x1
jax: 0.10.0
libtpu: 0.0.40
codegen_flags: <defaults>
</compile_context>

<pallas_src>
import functools
import math

import jax
import jax.numpy as jnp
from jax import lax
from jax.experimental import pallas as pl
from jax.experimental.pallas import tpu as pltpu

COMPUTE_DTYPE = jnp.bfloat16          # MXU input dtype; accumulation stays f32
SQRT_2_OVER_PI = math.sqrt(2.0 / math.pi)
VMEM_LIMIT = 64 * 1024 * 1024         # <= physical VMEM on v5e/v6e (128 MiB) and v7x (64 MiB)
ROW_TILE_CANDIDATES = (512, 256, 128, 64, 32, 16, 8)
MLP_HIDDEN_CHUNK = 512                # gelu working-set chunk along the 4E hidden dim


def _round_up(n, m):
    return ((n + m - 1) // m) * m


# ----------------------------------------------------------------------------
# K1: LayerNorm1 + c_attn projection + r_attn key_r projection (folded into k)
# ----------------------------------------------------------------------------
def ln_qkv_kernel(x_ref, pos_ref, g1_ref, b1_ref, wc_ref, bc_ref, wr_ref, br_ref,
                  q_ref, k_ref, v_ref, *, eps, scale):
    # x_ref/pos_ref: (tn, E) f32; wc_ref: (E, 3E) bf16; wr_ref: (E, E) bf16
    x = x_ref[...]
    u = jnp.mean(x, axis=-1, keepdims=True)
    xc = x - u
    var = jnp.mean(xc * xc, axis=-1, keepdims=True)
    h = xc * lax.rsqrt(var + eps) * g1_ref[...] + b1_ref[...]

    qkv = jnp.dot(h.astype(COMPUTE_DTYPE), wc_ref[...],
                  preferred_element_type=jnp.float32) + bc_ref[...]
    kr = jnp.dot(pos_ref[...].astype(COMPUTE_DTYPE), wr_ref[...],
                 preferred_element_type=jnp.float32) + br_ref[...]

    E = x.shape[-1]
    q_ref[...] = (qkv[:, :E] * scale).astype(q_ref.dtype)       # scale folded into q
    k_ref[...] = (qkv[:, E:2 * E] + kr).astype(k_ref.dtype)     # k_r folded into k
    v_ref[...] = qkv[:, 2 * E:3 * E].astype(v_ref.dtype)


# ----------------------------------------------------------------------------
# K2: multi-head attention (per batch element)
# ----------------------------------------------------------------------------
def attn_kernel(q_ref, k_ref, v_ref, a_ref, att_ref, *, n_head, masked_lm):
    # q_ref/k_ref/v_ref/a_ref: (S, E); att_ref: (1, H, S, S)
    S, E = q_ref.shape
    Dh = E // n_head

    if not masked_lm:
        row = lax.broadcasted_iota(jnp.int32, (S, S), 0)
        col = lax.broadcasted_iota(jnp.int32, (S, S), 1)
        keep = row >= col                                        # tril causal mask

    dn = (((1,), (1,)), ((), ()))                                # contract last dims (no .T)
    parts = []
    for h in range(n_head):
        lo, hi = h * Dh, (h + 1) * Dh
        qh = q_ref[:, lo:hi].astype(COMPUTE_DTYPE)               # (S, Dh), already scaled
        kh = k_ref[:, lo:hi].astype(COMPUTE_DTYPE)               # (S, Dh), already k + k_r
        vh = v_ref[:, lo:hi].astype(COMPUTE_DTYPE)

        w = lax.dot_general(qh, kh, dn, preferred_element_type=jnp.float32)
        if not masked_lm:
            w = jnp.where(keep, w, -1e10)                        # == w*b + -1e10*(1-b)

        w = w - jnp.max(w, axis=-1, keepdims=True)
        e = jnp.exp(w)
        inv = pl.reciprocal(jnp.sum(e, axis=-1, keepdims=True), approx=True)
        att = e * inv

        att_ref[0, h] = att.astype(att_ref.dtype)
        parts.append(jnp.dot(att.astype(COMPUTE_DTYPE), vh,
                             preferred_element_type=jnp.float32))

    # merge heads with a single full-width lane-dense store
    a_ref[...] = jnp.concatenate(parts, axis=-1).astype(a_ref.dtype)


# ----------------------------------------------------------------------------
# K3: residual + LayerNorm2 + MLP (tanh-gelu, hidden dim chunked) + residual
# ----------------------------------------------------------------------------
def res_ln_mlp_kernel(x_ref, a_ref, g2_ref, b2_ref, wfc_ref, bfc_ref,
                      wpr_ref, bpr_ref, o_ref, *, eps, hidden_chunk):
    x1 = x_ref[...] + a_ref[...]
    u = jnp.mean(x1, axis=-1, keepdims=True)
    xc = x1 - u
    var = jnp.mean(xc * xc, axis=-1, keepdims=True)
    m = (xc * lax.rsqrt(var + eps) * g2_ref[...] + b2_ref[...]).astype(COMPUTE_DTYPE)

    hidden = wfc_ref.shape[1]
    acc = None
    for c0 in range(0, hidden, hidden_chunk):
        c1 = c0 + hidden_chunk
        hmid = jnp.dot(m, wfc_ref[:, c0:c1],
                       preferred_element_type=jnp.float32) + bfc_ref[:, c0:c1]
        hmid = 0.5 * hmid * (1.0 + jnp.tanh(
            SQRT_2_OVER_PI * (hmid + 0.044715 * hmid * hmid * hmid)))
        part = jnp.dot(hmid.astype(COMPUTE_DTYPE), wpr_ref[c0:c1, :],
                       preferred_element_type=jnp.float32)
        acc = part if acc is None else acc + part

    # dropout (eval mode) == identity
    o_ref[...] = (x1 + acc + bpr_ref[...]).astype(o_ref.dtype)


# ----------------------------------------------------------------------------
# Wrapper
# ----------------------------------------------------------------------------
@functools.partial(jax.jit,
                   static_argnames=("n_head", "n_ctx", "layer_norm_epsilon", "masked_lm"))
def encoding_block_forward(x, pos_emb, params, *, n_head, n_ctx,
                           layer_norm_epsilon=1e-12, masked_lm=False):
    """x, pos_emb: [B, S, E] f32. Returns (x_out [B,S,E], att [B,H,S,S])."""
    B, S, E = x.shape
    assert S == n_ctx, "only seq_len == n_ctx supported"
    assert E % n_head == 0
    assert S % 8 == 0, "seq_len must be a multiple of 8"
    H = n_head
    Dh = E // H
    N = B * S

    # Row tile for K1/K3: largest candidate dividing the (8-aligned) row count.
    Np = _round_up(N, 8)
    tn = next(t for t in ROW_TILE_CANDIDATES if Np % t == 0)
    grid_rows = Np // tn

    x2d = x.reshape(N, E)
    p2d = pos_emb.reshape(N, E)
    if Np != N:  # rare fallback; common path has no pad/copy between kernels
        x2d = jnp.pad(x2d, ((0, Np - N), (0, 0)))
        p2d = jnp.pad(p2d, ((0, Np - N), (0, 0)))

    g1, b1 = params["ln_1"]
    wc, bc = params["c_attn"]           # (E, 3E), (3E,)  -- natural Conv1D layout, no transpose
    wr, br = params["r_attn"]           # (E, 3E), (3E,)
    g2, b2 = params["ln_2"]
    wfc, bfc = params["mlp_c_fc"]       # (E, 4E), (4E,)
    wpr, bpr = params["mlp_c_proj"]     # (4E, E), (E,)

    # Only the key_r third of r_attn is consumed downstream.
    wr_k = wr[:, E:2 * E]
    br_k = br[E:2 * E]

    # bf16 weights for the MXU (f32 accumulation in-kernel); biases stay f32.
    wc_c = wc.astype(COMPUTE_DTYPE)
    wr_c = wr_k.astype(COMPUTE_DTYPE)
    wfc_c = wfc.astype(COMPUTE_DTYPE)
    wpr_c = wpr.astype(COMPUTE_DTYPE)

    row_cp = pltpu.CompilerParams(dimension_semantics=("parallel",),
                                  vmem_limit_bytes=VMEM_LIMIT)

    # ---- K1: LN1 + q (scaled), k + k_r, v -----------------------------------
    scale = 1.0 / math.sqrt(Dh)
    q_flat, k_flat, v_flat = pl.pallas_call(
        functools.partial(ln_qkv_kernel, eps=layer_norm_epsilon, scale=scale),
        out_shape=tuple(jax.ShapeDtypeStruct((Np, E), jnp.float32) for _ in range(3)),
        grid_spec=pltpu.PrefetchScalarGridSpec(
            num_scalar_prefetch=0,
            grid=(grid_rows,),
            in_specs=[
                pl.BlockSpec((tn, E), lambda i: (i, 0)),
                pl.BlockSpec((tn, E), lambda i: (i, 0)),
                pl.BlockSpec((1, E), lambda i: (0, 0)),
                pl.BlockSpec((1, E), lambda i: (0, 0)),
                pl.BlockSpec((E, 3 * E), lambda i: (0, 0)),
                pl.BlockSpec((1, 3 * E), lambda i: (0, 0)),
                pl.BlockSpec((E, E), lambda i: (0, 0)),
                pl.BlockSpec((1, E), lambda i: (0, 0)),
            ],
            out_specs=[pl.BlockSpec((tn, E), lambda i: (i, 0))] * 3),
        compiler_params=row_cp,
    )(x2d, p2d, g1.reshape(1, E), b1.reshape(1, E),
      wc_c, bc.reshape(1, 3 * E), wr_c, br_k.reshape(1, E))

    # ---- K2: attention (consumes the flat K1 outputs directly) --------------
    a_flat, att = pl.pallas_call(
        functools.partial(attn_kernel, n_head=H, masked_lm=masked_lm),
        out_shape=(jax.ShapeDtypeStruct((Np, E), jnp.float32),
                   jax.ShapeDtypeStruct((B, H, S, S), jnp.float32)),
        grid_spec=pltpu.PrefetchScalarGridSpec(
            num_scalar_prefetch=0,
            grid=(B,),
            in_specs=[pl.BlockSpec((S, E), lambda b: (b, 0))] * 3,
            out_specs=[
                pl.BlockSpec((S, E), lambda b: (b, 0)),
                pl.BlockSpec((1, H, S, S), lambda b: (b, 0, 0, 0)),
            ]),
        compiler_params=pltpu.CompilerParams(dimension_semantics=("parallel",),
                                             vmem_limit_bytes=VMEM_LIMIT),
    )(q_flat, k_flat, v_flat)

    # ---- K3: residual + LN2 + MLP + residual (consumes flat `a` directly) ----
    hidden = 4 * E
    hidden_chunk = MLP_HIDDEN_CHUNK if hidden % MLP_HIDDEN_CHUNK == 0 else hidden
    out_flat = pl.pallas_call(
        functools.partial(res_ln_mlp_kernel, eps=layer_norm_epsilon,
                          hidden_chunk=hidden_chunk),
        out_shape=jax.ShapeDtypeStruct((Np, E), jnp.float32),
        grid_spec=pltpu.PrefetchScalarGridSpec(
            num_scalar_prefetch=0,
            grid=(grid_rows,),
            in_specs=[
                pl.BlockSpec((tn, E), lambda i: (i, 0)),
                pl.BlockSpec((tn, E), lambda i: (i, 0)),
                pl.BlockSpec((1, E), lambda i: (0, 0)),
                pl.BlockSpec((1, E), lambda i: (0, 0)),
                pl.BlockSpec((E, hidden), lambda i: (0, 0)),
                pl.BlockSpec((1, hidden), lambda i: (0, 0)),
                pl.BlockSpec((hidden, E), lambda i: (0, 0)),
                pl.BlockSpec((1, E), lambda i: (0, 0)),
            ],
            out_specs=pl.BlockSpec((tn, E), lambda i: (i, 0))),
        compiler_params=row_cp,
    )(x2d, a_flat, g2.reshape(1, E), b2.reshape(1, E),
      wfc_c, bfc.reshape(1, hidden), wpr_c, bpr.reshape(1, E))

    out = out_flat[:N].reshape(B, S, E)
    return out, att


# ----------------------------------------------------------------------------
# Pure-JAX reference (mirrors the PyTorch forward exactly)
# ----------------------------------------------------------------------------
def reference_forward(x, pos_emb, params, *, n_head, n_ctx, eps, masked_lm):
    B, S, E = x.shape
    H, Dh = n_head, E // n_head

    def conv1d(t, w, b):
        return t @ w + b

    def layernorm(t, g, beta):
        u = t.mean(-1, keepdims=True)
        s = ((t - u) ** 2).mean(-1, keepdims=True)
        return g * ((t - u) / jnp.sqrt(s + eps)) + beta

    enc = layernorm(x, *params["ln_1"])
    q, k, v = jnp.split(conv1d(enc, *params["c_attn"]), 3, axis=-1)
    _, k_r, _ = jnp.split(conv1d(pos_emb, *params["r_attn"]), 3, axis=-1)

    def split_heads(t):
        return t.reshape(B, S, H, Dh).transpose(0, 2, 1, 3)      # [B,H,S,Dh]

    qh = split_heads(q)[:, :, -n_ctx:, :]
    kh = split_heads(k).transpose(0, 1, 3, 2)                    # [B,H,Dh,S]
    krh = split_heads(k_r).transpose(0, 1, 3, 2)
    vh = split_heads(v)

    w = qh @ kh + qh @ krh
    w = w / math.sqrt(vh.shape[-1])
    if not masked_lm:
        bias = jnp.tril(jnp.ones((n_ctx, n_ctx), jnp.float32))[None, None]
        nd, ns = w.shape[-2], w.shape[-1]
        bm = bias[:, :, ns - nd:ns, :ns]
        w = w * bm + -1e10 * (1.0 - bm)
    att = jax.nn.softmax(w, axis=-1)
    a = (att @ vh).transpose(0, 2, 1, 3).reshape(B, S, E)

    x1 = x + a
    m = layernorm(x1, *params["ln_2"])
    h = conv1d(m, *params["mlp_c_fc"])
    h = 0.5 * h * (1.0 + jnp.tanh(SQRT_2_OVER_PI * (h + 0.044715 * h ** 3)))
    h2 = conv1d(h, *params["mlp_c_proj"])
    return x1 + h2, att


if __name__ == "__main__":
    B, n_ctx, n_embd, n_head = 2, 8, 32, 4   # batch, seq (= n_ctx), n_embd, n_head
    E = n_embd
    key = jax.random.PRNGKey(0)
    ks = jax.random.split(key, 14)

    def w_init(k, shape, std=0.02):
        return std * jax.random.normal(k, shape, dtype=jnp.float32)

    params = {
        "ln_1": (1.0 + 0.1 * jax.random.normal(ks[0], (E,), dtype=jnp.float32),
                 0.1 * jax.random.normal(ks[1], (E,), dtype=jnp.float32)),
        "c_attn": (w_init(ks[2], (E, 3 * E)), w_init(ks[3], (3 * E,))),
        "r_attn": (w_init(ks[4], (E, 3 * E)), w_init(ks[5], (3 * E,))),
        "ln_2": (1.0 + 0.1 * jax.random.normal(ks[6], (E,), dtype=jnp.float32),
                 0.1 * jax.random.normal(ks[7], (E,), dtype=jnp.float32)),
        "mlp_c_fc": (w_init(ks[8], (E, 4 * E)), w_init(ks[9], (4 * E,))),
        "mlp_c_proj": (w_init(ks[10], (4 * E, E)), w_init(ks[11], (E,))),
    }
    x = jax.random.normal(ks[12], (B, n_ctx, E), dtype=jnp.float32)
    pos_emb = jax.random.normal(ks[13], (B, n_ctx, E), dtype=jnp.float32)

    out, att = encoding_block_forward(x, pos_emb, params, n_head=n_head, n_ctx=n_ctx,
                                      layer_norm_epsilon=1e-12, masked_lm=False)
    jax.block_until_ready((out, att))

    ref_out, ref_att = reference_forward(x, pos_emb, params, n_head=n_head, n_ctx=n_ctx,
                                         eps=1e-12, masked_lm=False)
    assert out.shape == (B, n_ctx, E) and att.shape == (B, n_head, n_ctx, n_ctx)
    # bf16 MXU inputs (f32 accumulation) + approx softmax reciprocal -> loose-but-tight-enough
    # tolerances vs the f32 reference
    assert jnp.allclose(out, ref_out, atol=3e-2, rtol=3e-2), \
        float(jnp.max(jnp.abs(out - ref_out)))
    assert jnp.allclose(att, ref_att, atol=3e-2, rtol=3e-2), \
        float(jnp.max(jnp.abs(att - ref_att)))

    print("KERNEL_OK")
</pallas_src>

<mosaic_0001>
module attributes {stable_mosaic.version = 11 : i64} {
  func.func @ln_qkv_kernel(%arg0: i32, %arg1: memref<16x32xf32, #tpu.memory_space<vmem>>, %arg2: memref<16x32xf32, #tpu.memory_space<vmem>>, %arg3: memref<1x32xf32, #tpu.memory_space<vmem>>, %arg4: memref<1x32xf32, #tpu.memory_space<vmem>>, %arg5: memref<32x96xbf16, #tpu.memory_space<vmem>>, %arg6: memref<1x96xf32, #tpu.memory_space<vmem>>, %arg7: memref<32x32xbf16, #tpu.memory_space<vmem>>, %arg8: memref<1x32xf32, #tpu.memory_space<vmem>>, %arg9: memref<16x32xf32, #tpu.memory_space<vmem>>, %arg10: memref<16x32xf32, #tpu.memory_space<vmem>>, %arg11: memref<16x32xf32, #tpu.memory_space<vmem>>) attributes {dimension_semantics = [#tpu.dimension_semantics<parallel>], iteration_bounds = array<i64: 1>, scalar_prefetch = 0 : i64, scratch_operands = 0 : i64, tpu.core_type = #tpu.core_type<tc>, window_params = [{transform_indices = @transform_0, window_bounds = array<i64: 16, 32>}, {transform_indices = @transform_1, window_bounds = array<i64: 16, 32>}, {pipeline_mode = #tpu.pipeline_mode<synchronous>, transform_indices = @transform_2, window_bounds = array<i64: 1, 32>}, {pipeline_mode = #tpu.pipeline_mode<synchronous>, transform_indices = @transform_3, window_bounds = array<i64: 1, 32>}, {pipeline_mode = #tpu.pipeline_mode<synchronous>, transform_indices = @transform_4, window_bounds = array<i64: 32, 96>}, {pipeline_mode = #tpu.pipeline_mode<synchronous>, transform_indices = @transform_5, window_bounds = array<i64: 1, 96>}, {pipeline_mode = #tpu.pipeline_mode<synchronous>, transform_indices = @transform_6, window_bounds = array<i64: 32, 32>}, {pipeline_mode = #tpu.pipeline_mode<synchronous>, transform_indices = @transform_7, window_bounds = array<i64: 1, 32>}, {transform_indices = @transform_8, window_bounds = array<i64: 16, 32>}, {transform_indices = @transform_9, window_bounds = array<i64: 16, 32>}, {transform_indices = @transform_10, window_bounds = array<i64: 16, 32>}]} {
    %c0 = arith.constant 0 : index
    %c0_0 = arith.constant 0 : index
    %0 = vector.load %arg1[%c0, %c0_0] : memref<16x32xf32, #tpu.memory_space<vmem>>, vector<16x32xf32>
    %cst = arith.constant dense<0.000000e+00> : vector<16xf32>
    %1 = vector.multi_reduction <add>, %0, %cst [1] : vector<16x32xf32> to vector<16xf32>
    %2 = vector.shape_cast %1 : vector<16xf32> to vector<16x1xf32>
    %cst_1 = arith.constant 3.200000e+01 : f32
    %3 = vector.broadcast %cst_1 : f32 to vector<16x1xf32>
    %4 = arith.divf %2, %3 : vector<16x1xf32>
    %5 = vector.broadcast %4 : vector<16x1xf32> to vector<16x32xf32>
    %6 = arith.subf %0, %5 : vector<16x32xf32>
    %7 = arith.mulf %6, %6 : vector<16x32xf32>
    %cst_2 = arith.constant dense<0.000000e+00> : vector<16xf32>
    %8 = vector.multi_reduction <add>, %7, %cst_2 [1] : vector<16x32xf32> to vector<16xf32>
    %9 = vector.shape_cast %8 : vector<16xf32> to vector<16x1xf32>
    %cst_3 = arith.constant 3.200000e+01 : f32
    %10 = vector.broadcast %cst_3 : f32 to vector<16x1xf32>
    %11 = arith.divf %9, %10 : vector<16x1xf32>
    %cst_4 = arith.constant 9.99999996E-13 : f32
    %12 = vector.broadcast %cst_4 : f32 to vector<16x1xf32>
    %13 = arith.addf %11, %12 : vector<16x1xf32>
    %14 = math.rsqrt %13 : vector<16x1xf32>
    %15 = vector.broadcast %14 : vector<16x1xf32> to vector<16x32xf32>
    %16 = arith.mulf %6, %15 : vector<16x32xf32>
    %c0_5 = arith.constant 0 : index
    %c0_6 = arith.constant 0 : index
    %17 = vector.load %arg3[%c0_5, %c0_6] : memref<1x32xf32, #tpu.memory_space<vmem>>, vector<1x32xf32>
    %18 = vector.broadcast %17 : vector<1x32xf32> to vector<16x32xf32>
    %19 = arith.mulf %16, %18 : vector<16x32xf32>
    %c0_7 = arith.constant 0 : index
    %c0_8 = arith.constant 0 : index
    %20 = vector.load %arg4[%c0_7, %c0_8] : memref<1x32xf32, #tpu.memory_space<vmem>>, vector<1x32xf32>
    %21 = vector.broadcast %20 : vector<1x32xf32> to vector<16x32xf32>
    %22 = arith.addf %19, %21 : vector<16x32xf32>
    %23 = arith.truncf %22 : vector<16x32xf32> to vector<16x32xbf16>
    %c0_9 = arith.constant 0 : index
    %c0_10 = arith.constant 0 : index
    %24 = vector.load %arg5[%c0_9, %c0_10] : memref<32x96xbf16, #tpu.memory_space<vmem>>, vector<32x96xbf16>
    %cst_11 = arith.constant dense<0.000000e+00> : vector<16x96xf32>
    %25 = tpu.matmul %23, %24, %cst_11 {dimension_numbers = #tpu.dot_dimension_numbers<[1], [0], [0], [1], [0, 0, 1, 1], [], []>} : vector<16x32xbf16>, vector<32x96xbf16>, vector<16x96xf32> -> vector<16x96xf32>
    %c0_12 = arith.constant 0 : index
    %c0_13 = arith.constant 0 : index
    %26 = vector.load %arg6[%c0_12, %c0_13] : memref<1x96xf32, #tpu.memory_space<vmem>>, vector<1x96xf32>
    %27 = vector.broadcast %26 : vector<1x96xf32> to vector<16x96xf32>
    %28 = arith.addf %25, %27 : vector<16x96xf32>
    %c0_14 = arith.constant 0 : index
    %c0_15 = arith.constant 0 : index
    %29 = vector.load %arg2[%c0_14, %c0_15] : memref<16x32xf32, #tpu.memory_space<vmem>>, vector<16x32xf32>
    %30 = arith.truncf %29 : vector<16x32xf32> to vector<16x32xbf16>
    %c0_16 = arith.constant 0 : index
    %c0_17 = arith.constant 0 : index
    %31 = vector.load %arg7[%c0_16, %c0_17] : memref<32x32xbf16, #tpu.memory_space<vmem>>, vector<32x32xbf16>
    %cst_18 = arith.constant dense<0.000000e+00> : vector<16x32xf32>
    %32 = tpu.matmul %30, %31, %cst_18 {dimension_numbers = #tpu.dot_dimension_numbers<[1], [0], [0], [1], [0, 0, 1, 1], [], []>} : vector<16x32xbf16>, vector<32x32xbf16>, vector<16x32xf32> -> vector<16x32xf32>
    %c0_19 = arith.constant 0 : index
    %c0_20 = arith.constant 0 : index
    %33 = vector.load %arg8[%c0_19, %c0_20] : memref<1x32xf32, #tpu.memory_space<vmem>>, vector<1x32xf32>
    %34 = vector.broadcast %33 : vector<1x32xf32> to vector<16x32xf32>
    %35 = arith.addf %32, %34 : vector<16x32xf32>
    %36 = vector.extract_strided_slice %28 {offsets = [0, 0], sizes = [16, 32], strides = [1, 1]} : vector<16x96xf32> to vector<16x32xf32>
    %cst_21 = arith.constant 0.353553385 : f32
    %37 = vector.broadcast %cst_21 : f32 to vector<16x32xf32>
    %38 = arith.mulf %36, %37 : vector<16x32xf32>
    %c0_22 = arith.constant 0 : index
    %c0_23 = arith.constant 0 : index
    %39 = vector.load %arg9[%c0_22, %c0_23] : memref<16x32xf32, #tpu.memory_space<vmem>>, vector<16x32xf32>
    tpu.vector_store %arg9[%c0_22, %c0_23], %38 {strides = array<i32>} : memref<16x32xf32, #tpu.memory_space<vmem>>, vector<16x32xf32>,
    %40 = vector.extract_strided_slice %28 {offsets = [0, 32], sizes = [16, 32], strides = [1, 1]} : vector<16x96xf32> to vector<16x32xf32>
    %41 = arith.addf %40, %35 : vector<16x32xf32>
    %c0_24 = arith.constant 0 : index
    %c0_25 = arith.constant 0 : index
    %42 = vector.load %arg10[%c0_24, %c0_25] : memref<16x32xf32, #tpu.memory_space<vmem>>, vector<16x32xf32>
    tpu.vector_store %arg10[%c0_24, %c0_25], %41 {strides = array<i32>} : memref<16x32xf32, #tpu.memory_space<vmem>>, vector<16x32xf32>,
    %43 = vector.extract_strided_slice %28 {offsets = [0, 64], sizes = [16, 32], strides = [1, 1]} : vector<16x96xf32> to vector<16x32xf32>
    %c0_26 = arith.constant 0 : index
    %c0_27 = arith.constant 0 : index
    %44 = vector.load %arg11[%c0_26, %c0_27] : memref<16x32xf32, #tpu.memory_space<vmem>>, vector<16x32xf32>
    tpu.vector_store %arg11[%c0_26, %c0_27], %43 {strides = array<i32>} : memref<16x32xf32, #tpu.memory_space<vmem>>, vector<16x32xf32>,
    return
  }
  func.func @transform_0(%arg0: i32) -> (i32, i32) {
    %c0_i32 = arith.constant 0 : i32
    %c0_i32_0 = arith.constant 0 : i32
    return %arg0, %c0_i32 : i32, i32
  }
  func.func @transform_1(%arg0: i32) -> (i32, i32) {
    %c0_i32 = arith.constant 0 : i32
    %c0_i32_0 = arith.constant 0 : i32
    return %arg0, %c0_i32 : i32, i32
  }
  func.func @transform_2(%arg0: i32) -> (i32, i32) {
    %c0_i32 = arith.constant 0 : i32
    %c0_i32_0 = arith.constant 0 : i32
    %c0_i32_1 = arith.constant 0 : i32
    return %c0_i32, %c0_i32_0 : i32, i32
  }
  func.func @transform_3(%arg0: i32) -> (i32, i32) {
    %c0_i32 = arith.constant 0 : i32
    %c0_i32_0 = arith.constant 0 : i32
    %c0_i32_1 = arith.constant 0 : i32
    return %c0_i32, %c0_i32_0 : i32, i32
  }
  func.func @transform_4(%arg0: i32) -> (i32, i32) {
    %c0_i32 = arith.constant 0 : i32
    %c0_i32_0 = arith.constant 0 : i32
    %c0_i32_1 = arith.constant 0 : i32
    return %c0_i32, %c0_i32_0 : i32, i32
  }
  func.func @transform_5(%arg0: i32) -> (i32, i32) {
    %c0_i32 = arith.constant 0 : i32
    %c0_i32_0 = arith.constant 0 : i32
    %c0_i32_1 = arith.constant 0 : i32
    return %c0_i32, %c0_i32_0 : i32, i32
  }
  func.func @transform_6(%arg0: i32) -> (i32, i32) {
    %c0_i32 = arith.constant 0 : i32
    %c0_i32_0 = arith.constant 0 : i32
    %c0_i32_1 = arith.constant 0 : i32
    return %c0_i32, %c0_i32_0 : i32, i32
  }
  func.func @transform_7(%arg0: i32) -> (i32, i32) {
    %c0_i32 = arith.constant 0 : i32
    %c0_i32_0 = arith.constant 0 : i32
    %c0_i32_1 = arith.constant 0 : i32
    return %c0_i32, %c0_i32_0 : i32, i32
  }
  func.func @transform_8(%arg0: i32) -> (i32, i32) {
    %c0_i32 = arith.constant 0 : i32
    %c0_i32_0 = arith.constant 0 : i32
    return %arg0, %c0_i32 : i32, i32
  }
  func.func @transform_9(%arg0: i32) -> (i32, i32) {
    %c0_i32 = arith.constant 0 : i32
    %c0_i32_0 = arith.constant 0 : i32
    return %arg0, %c0_i32 : i32, i32
  }
  func.func @transform_10(%arg0: i32) -> (i32, i32) {
    %c0_i32 = arith.constant 0 : i32
    %c0_i32_0 = arith.constant 0 : i32
    return %arg0, %c0_i32 : i32, i32
  }
}

module attributes {stable_mosaic.version = 11 : i64} {
  func.func @res_ln_mlp_kernel(%arg0: i32, %arg1: memref<16x32xf32, #tpu.memory_space<vmem>>, %arg2: memref<16x32xf32, #tpu.memory_space<vmem>>, %arg3: memref<1x32xf32, #tpu.memory_space<vmem>>, %arg4: memref<1x32xf32, #tpu.memory_space<vmem>>, %arg5: memref<32x128xbf16, #tpu.memory_space<vmem>>, %arg6: memref<1x128xf32, #tpu.memory_space<vmem>>, %arg7: memref<128x32xbf16, #tpu.memory_space<vmem>>, %arg8: memref<1x32xf32, #tpu.memory_space<vmem>>, %arg9: memref<16x32xf32, #tpu.memory_space<vmem>>) attributes {dimension_semantics = [#tpu.dimension_semantics<parallel>], iteration_bounds = array<i64: 1>, scalar_prefetch = 0 : i64, scratch_operands = 0 : i64, tpu.core_type = #tpu.core_type<tc>, window_params = [{transform_indices = @transform_0, window_bounds = array<i64: 16, 32>}, {transform_indices = @transform_1, window_bounds = array<i64: 16, 32>}, {pipeline_mode = #tpu.pipeline_mode<synchronous>, transform_indices = @transform_2, window_bounds = array<i64: 1, 32>}, {pipeline_mode = #tpu.pipeline_mode<synchronous>, transform_indices = @transform_3, window_bounds = array<i64: 1, 32>}, {pipeline_mode = #tpu.pipeline_mode<synchronous>, transform_indices = @transform_4, window_bounds = array<i64: 32, 128>}, {pipeline_mode = #tpu.pipeline_mode<synchronous>, transform_indices = @transform_5, window_bounds = array<i64: 1, 128>}, {pipeline_mode = #tpu.pipeline_mode<synchronous>, transform_indices = @transform_6, window_bounds = array<i64: 128, 32>}, {pipeline_mode = #tpu.pipeline_mode<synchronous>, transform_indices = @transform_7, window_bounds = array<i64: 1, 32>}, {transform_indices = @transform_8, window_bounds = array<i64: 16, 32>}]} {
    %c0 = arith.constant 0 : index
    %c0_0 = arith.constant 0 : index
    %0 = vector.load %arg1[%c0, %c0_0] : memref<16x32xf32, #tpu.memory_space<vmem>>, vector<16x32xf32>
    %c0_1 = arith.constant 0 : index
    %c0_2 = arith.constant 0 : index
    %1 = vector.load %arg2[%c0_1, %c0_2] : memref<16x32xf32, #tpu.memory_space<vmem>>, vector<16x32xf32>
    %2 = arith.addf %0, %1 : vector<16x32xf32>
    %cst = arith.constant dense<0.000000e+00> : vector<16xf32>
    %3 = vector.multi_reduction <add>, %2, %cst [1] : vector<16x32xf32> to vector<16xf32>
    %4 = vector.shape_cast %3 : vector<16xf32> to vector<16x1xf32>
    %cst_3 = arith.constant 3.200000e+01 : f32
    %5 = vector.broadcast %cst_3 : f32 to vector<16x1xf32>
    %6 = arith.divf %4, %5 : vector<16x1xf32>
    %7 = vector.broadcast %6 : vector<16x1xf32> to vector<16x32xf32>
    %8 = arith.subf %2, %7 : vector<16x32xf32>
    %9 = arith.mulf %8, %8 : vector<16x32xf32>
    %cst_4 = arith.constant dense<0.000000e+00> : vector<16xf32>
    %10 = vector.multi_reduction <add>, %9, %cst_4 [1] : vector<16x32xf32> to vector<16xf32>
    %11 = vector.shape_cast %10 : vector<16xf32> to vector<16x1xf32>
    %cst_5 = arith.constant 3.200000e+01 : f32
    %12 = vector.broadcast %cst_5 : f32 to vector<16x1xf32>
    %13 = arith.divf %11, %12 : vector<16x1xf32>
    %cst_6 = arith.constant 9.99999996E-13 : f32
    %14 = vector.broadcast %cst_6 : f32 to vector<16x1xf32>
    %15 = arith.addf %13, %14 : vector<16x1xf32>
    %16 = math.rsqrt %15 : vector<16x1xf32>
    %17 = vector.broadcast %16 : vector<16x1xf32> to vector<16x32xf32>
    %18 = arith.mulf %8, %17 : vector<16x32xf32>
    %c0_7 = arith.constant 0 : index
    %c0_8 = arith.constant 0 : index
    %19 = vector.load %arg3[%c0_7, %c0_8] : memref<1x32xf32, #tpu.memory_space<vmem>>, vector<1x32xf32>
    %20 = vector.broadcast %19 : vector<1x32xf32> to vector<16x32xf32>
    %21 = arith.mulf %18, %20 : vector<16x32xf32>
    %c0_9 = arith.constant 0 : index
    %c0_10 = arith.constant 0 : index
    %22 = vector.load %arg4[%c0_9, %c0_10] : memref<1x32xf32, #tpu.memory_space<vmem>>, vector<1x32xf32>
    %23 = vector.broadcast %22 : vector<1x32xf32> to vector<16x32xf32>
    %24 = arith.addf %21, %23 : vector<16x32xf32>
    %25 = arith.truncf %24 : vector<16x32xf32> to vector<16x32xbf16>
    %c0_11 = arith.constant 0 : index
    %c0_12 = arith.constant 0 : index
    %26 = vector.load %arg5[%c0_11, %c0_12] : memref<32x128xbf16, #tpu.memory_space<vmem>>, vector<32x128xbf16>
    %cst_13 = arith.constant dense<0.000000e+00> : vector<16x128xf32>
    %27 = tpu.matmul %25, %26, %cst_13 {dimension_numbers = #tpu.dot_dimension_numbers<[1], [0], [0], [1], [0, 0, 1, 1], [], []>} : vector<16x32xbf16>, vector<32x128xbf16>, vector<16x128xf32> -> vector<16x128xf32>
    %c0_14 = arith.constant 0 : index
    %c0_15 = arith.constant 0 : index
    %28 = vector.load %arg6[%c0_14, %c0_15] : memref<1x128xf32, #tpu.memory_space<vmem>>, vector<1x128xf32>
    %29 = vector.broadcast %28 : vector<1x128xf32> to vector<16x128xf32>
    %30 = arith.addf %27, %29 : vector<16x128xf32>
    %cst_16 = arith.constant 5.000000e-01 : f32
    %31 = vector.broadcast %cst_16 : f32 to vector<16x128xf32>
    %32 = arith.mulf %31, %30 : vector<16x128xf32>
    %cst_17 = arith.constant 4.471500e-02 : f32
    %33 = vector.broadcast %cst_17 : f32 to vector<16x128xf32>
    %34 = arith.mulf %33, %30 : vector<16x128xf32>
    %35 = arith.mulf %34, %30 : vector<16x128xf32>
    %36 = arith.mulf %35, %30 : vector<16x128xf32>
    %37 = arith.addf %30, %36 : vector<16x128xf32>
    %cst_18 = arith.constant 0.797884583 : f32
    %38 = vector.broadcast %cst_18 : f32 to vector<16x128xf32>
    %39 = arith.mulf %38, %37 : vector<16x128xf32>
    %40 = math.tanh %39 : vector<16x128xf32>
    %cst_19 = arith.constant 1.000000e+00 : f32
    %41 = vector.broadcast %cst_19 : f32 to vector<16x128xf32>
    %42 = arith.addf %41, %40 : vector<16x128xf32>
    %43 = arith.mulf %32, %42 : vector<16x128xf32>
    %44 = arith.truncf %43 : vector<16x128xf32> to vector<16x128xbf16>
    %c0_20 = arith.constant 0 : index
    %c0_21 = arith.constant 0 : index
    %45 = vector.load %arg7[%c0_20, %c0_21] : memref<128x32xbf16, #tpu.memory_space<vmem>>, vector<128x32xbf16>
    %cst_22 = arith.constant dense<0.000000e+00> : vector<16x32xf32>
    %46 = tpu.matmul %44, %45, %cst_22 {dimension_numbers = #tpu.dot_dimension_numbers<[1], [0], [0], [1], [0, 0, 1, 1], [], []>} : vector<16x128xbf16>, vector<128x32xbf16>, vector<16x32xf32> -> vector<16x32xf32>
    %47 = arith.addf %2, %46 : vector<16x32xf32>
    %c0_23 = arith.constant 0 : index
    %c0_24 = arith.constant 0 : index
    %48 = vector.load %arg8[%c0_23, %c0_24] : memref<1x32xf32, #tpu.memory_space<vmem>>, vector<1x32xf32>
    %49 = vector.broadcast %48 : vector<1x32xf32> to vector<16x32xf32>
    %50 = arith.addf %47, %49 : vector<16x32xf32>
    %c0_25 = arith.constant 0 : index
    %c0_26 = arith.constant 0 : index
    %51 = vector.load %arg9[%c0_25, %c0_26] : memref<16x32xf32, #tpu.memory_space<vmem>>, vector<16x32xf32>
    tpu.vector_store %arg9[%c0_25, %c0_26], %50 {strides = array<i32>} : memref<16x32xf32, #tpu.memory_space<vmem>>, vector<16x32xf32>,
    return
  }
  func.func @transform_0(%arg0: i32) -> (i32, i32) {
    %c0_i32 = arith.constant 0 : i32
    %c0_i32_0 = arith.constant 0 : i32
    return %arg0, %c0_i32 : i32, i32
  }
  func.func @transform_1(%arg0: i32) -> (i32, i32) {
    %c0_i32 = arith.constant 0 : i32
    %c0_i32_0 = arith.constant 0 : i32
    return %arg0, %c0_i32 : i32, i32
  }
  func.func @transform_2(%arg0: i32) -> (i32, i32) {
    %c0_i32 = arith.constant 0 : i32
    %c0_i32_0 = arith.constant 0 : i32
    %c0_i32_1 = arith.constant 0 : i32
    return %c0_i32, %c0_i32_0 : i32, i32
  }
  func.func @transform_3(%arg0: i32) -> (i32, i32) {
    %c0_i32 = arith.constant 0 : i32
    %c0_i32_0 = arith.constant 0 : i32
    %c0_i32_1 = arith.constant 0 : i32
    return %c0_i32, %c0_i32_0 : i32, i32
  }
  func.func @transform_4(%arg0: i32) -> (i32, i32) {
    %c0_i32 = arith.constant 0 : i32
    %c0_i32_0 = arith.constant 0 : i32
    %c0_i32_1 = arith.constant 0 : i32
    return %c0_i32, %c0_i32_0 : i32, i32
  }
  func.func @transform_5(%arg0: i32) -> (i32, i32) {
    %c0_i32 = arith.constant 0 : i32
    %c0_i32_0 = arith.constant 0 : i32
    %c0_i32_1 = arith.constant 0 : i32
    return %c0_i32, %c0_i32_0 : i32, i32
  }
  func.func @transform_6(%arg0: i32) -> (i32, i32) {
    %c0_i32 = arith.constant 0 : i32
    %c0_i32_0 = arith.constant 0 : i32
    %c0_i32_1 = arith.constant 0 : i32
    return %c0_i32, %c0_i32_0 : i32, i32
  }
  func.func @transform_7(%arg0: i32) -> (i32, i32) {
    %c0_i32 = arith.constant 0 : i32
    %c0_i32_0 = arith.constant 0 : i32
    %c0_i32_1 = arith.constant 0 : i32
    return %c0_i32, %c0_i32_0 : i32, i32
  }
  func.func @transform_8(%arg0: i32) -> (i32, i32) {
    %c0_i32 = arith.constant 0 : i32
    %c0_i32_0 = arith.constant 0 : i32
    return %arg0, %c0_i32 : i32, i32
  }
}

module attributes {stable_mosaic.version = 11 : i64} {
  func.func @attn_kernel(%arg0: i32, %arg1: memref<8x32xf32, #tpu.memory_space<vmem>>, %arg2: memref<8x32xf32, #tpu.memory_space<vmem>>, %arg3: memref<8x32xf32, #tpu.memory_space<vmem>>, %arg4: memref<8x32xf32, #tpu.memory_space<vmem>>, %arg5: memref<1x4x8x8xf32, #tpu.memory_space<vmem>>) attributes {dimension_semantics = [#tpu.dimension_semantics<parallel>], iteration_bounds = array<i64: 2>, scalar_prefetch = 0 : i64, scratch_operands = 0 : i64, tpu.core_type = #tpu.core_type<tc>, window_params = [{transform_indices = @transform_0, window_bounds = array<i64: 8, 32>}, {transform_indices = @transform_1, window_bounds = array<i64: 8, 32>}, {transform_indices = @transform_2, window_bounds = array<i64: 8, 32>}, {transform_indices = @transform_3, window_bounds = array<i64: 8, 32>}, {transform_indices = @transform_4, window_bounds = array<i64: 1, 4, 8, 8>}]} {
    %0 = tpu.iota {dimensions = array<i32: 0>} : vector<8x8xi32>
    %1 = tpu.iota {dimensions = array<i32: 1>} : vector<8x8xi32>
    %2 = arith.cmpi sge, %0, %1 : vector<8x8xi32>
    %c0 = arith.constant 0 : index
    %c0_0 = arith.constant 0 : index
    %3 = vector.load %arg1[%c0, %c0_0] : memref<8x32xf32, #tpu.memory_space<vmem>>, vector<8x8xf32>
    %4 = arith.truncf %3 : vector<8x8xf32> to vector<8x8xbf16>
    %c0_1 = arith.constant 0 : index
    %c0_2 = arith.constant 0 : index
    %5 = vector.load %arg2[%c0_1, %c0_2] : memref<8x32xf32, #tpu.memory_space<vmem>>, vector<8x8xf32>
    %6 = arith.truncf %5 : vector<8x8xf32> to vector<8x8xbf16>
    %c0_3 = arith.constant 0 : index
    %c0_4 = arith.constant 0 : index
    %7 = vector.load %arg3[%c0_3, %c0_4] : memref<8x32xf32, #tpu.memory_space<vmem>>, vector<8x8xf32>
    %8 = arith.truncf %7 : vector<8x8xf32> to vector<8x8xbf16>
    %cst = arith.constant dense<0.000000e+00> : vector<8x8xf32>
    %9 = tpu.matmul %4, %6, %cst {dimension_numbers = #tpu.dot_dimension_numbers<[1], [1], [0], [0], [0, 0, 1, 0], [], []>} : vector<8x8xbf16>, vector<8x8xbf16>, vector<8x8xf32> -> vector<8x8xf32>
    %cst_5 = arith.constant -1.000000e+10 : f32
    %10 = vector.broadcast %cst_5 : f32 to vector<8x8xf32>
    %11 = arith.select %2, %9, %10 : vector<8x8xi1>, vector<8x8xf32>
    %cst_6 = arith.constant dense<0xFF800000> : vector<8xf32>
    %12 = vector.multi_reduction <maximumf>, %11, %cst_6 [1] : vector<8x8xf32> to vector<8xf32>
    %13 = vector.shape_cast %12 : vector<8xf32> to vector<8x1xf32>
    %14 = vector.broadcast %13 : vector<8x1xf32> to vector<8x8xf32>
    %15 = arith.subf %11, %14 : vector<8x8xf32>
    %16 = math.exp %15 : vector<8x8xf32>
    %cst_7 = arith.constant dense<0.000000e+00> : vector<8xf32>
    %17 = vector.multi_reduction <add>, %16, %cst_7 [1] : vector<8x8xf32> to vector<8xf32>
    %18 = vector.shape_cast %17 : vector<8xf32> to vector<8x1xf32>
    %19 = tpu.reciprocal %18 {approx = true} : vector<8x1xf32> -> vector<8x1xf32>
    %20 = vector.broadcast %19 : vector<8x1xf32> to vector<8x8xf32>
    %21 = arith.mulf %16, %20 : vector<8x8xf32>
    %c0_8 = arith.constant 0 : index
    %c0_9 = arith.constant 0 : index
    %c0_10 = arith.constant 0 : index
    %c0_11 = arith.constant 0 : index
    %22 = vector.load %arg5[%c0_8, %c0_9, %c0_10, %c0_11] : memref<1x4x8x8xf32, #tpu.memory_space<vmem>>, vector<1x1x8x8xf32>
    %23 = vector.shape_cast %22 : vector<1x1x8x8xf32> to vector<8x8xf32>
    %24 = vector.shape_cast %21 : vector<8x8xf32> to vector<1x1x8x8xf32>
    tpu.vector_store %arg5[%c0_8, %c0_9, %c0_10, %c0_11], %24 {strides = array<i32>} : memref<1x4x8x8xf32, #tpu.memory_space<vmem>>, vector<1x1x8x8xf32>,
    %25 = arith.truncf %21 : vector<8x8xf32> to vector<8x8xbf16>
    %cst_12 = arith.constant dense<0.000000e+00> : vector<8x8xf32>
    %26 = tpu.matmul %25, %8, %cst_12 {dimension_numbers = #tpu.dot_dimension_numbers<[1], [0], [0], [1], [0, 0, 1, 1], [], []>} : vector<8x8xbf16>, vector<8x8xbf16>, vector<8x8xf32> -> vector<8x8xf32>
    %c0_13 = arith.constant 0 : index
    %c8 = arith.constant 8 : index
    %27 = vector.load %arg1[%c0_13, %c8] : memref<8x32xf32, #tpu.memory_space<vmem>>, vector<8x8xf32>
    %28 = arith.truncf %27 : vector<8x8xf32> to vector<8x8xbf16>
    %c0_14 = arith.constant 0 : index
    %c8_15 = arith.constant 8 : index
    %29 = vector.load %arg2[%c0_14, %c8_15] : memref<8x32xf32, #tpu.memory_space<vmem>>, vector<8x8xf32>
    %30 = arith.truncf %29 : vector<8x8xf32> to vector<8x8xbf16>
    %c0_16 = arith.constant 0 : index
    %c8_17 = arith.constant 8 : index
    %31 = vector.load %arg3[%c0_16, %c8_17] : memref<8x32xf32, #tpu.memory_space<vmem>>, vector<8x8xf32>
    %32 = arith.truncf %31 : vector<8x8xf32> to vector<8x8xbf16>
    %cst_18 = arith.constant dense<0.000000e+00> : vector<8x8xf32>
    %33 = tpu.matmul %28, %30, %cst_18 {dimension_numbers = #tpu.dot_dimension_numbers<[1], [1], [0], [0], [0, 0, 1, 0], [], []>} : vector<8x8xbf16>, vector<8x8xbf16>, vector<8x8xf32> -> vector<8x8xf32>
    %cst_19 = arith.constant -1.000000e+10 : f32
    %34 = vector.broadcast %cst_19 : f32 to vector<8x8xf32>
    %35 = arith.select %2, %33, %34 : vector<8x8xi1>, vector<8x8xf32>
    %cst_20 = arith.constant dense<0xFF800000> : vector<8xf32>
    %36 = vector.multi_reduction <maximumf>, %35, %cst_20 [1] : vector<8x8xf32> to vector<8xf32>
    %37 = vector.shape_cast %36 : vector<8xf32> to vector<8x1xf32>
    %38 = vector.broadcast %37 : vector<8x1xf32> to vector<8x8xf32>
    %39 = arith.subf %35, %38 : vector<8x8xf32>
    %40 = math.exp %39 : vector<8x8xf32>
    %cst_21 = arith.constant dense<0.000000e+00> : vector<8xf32>
    %41 = vector.multi_reduction <add>, %40, %cst_21 [1] : vector<8x8xf32> to vector<8xf32>
    %42 = vector.shape_cast %41 : vector<8xf32> to vector<8x1xf32>
    %43 = tpu.reciprocal %42 {approx = true} : vector<8x1xf32> -> vector<8x1xf32>
    %44 = vector.broadcast %43 : vector<8x1xf32> to vector<8x8xf32>
    %45 = arith.mulf %40, %44 : vector<8x8xf32>
    %c0_22 = arith.constant 0 : index
    %c1 = arith.constant 1 : index
    %c0_23 = arith.constant 0 : index
    %c0_24 = arith.constant 0 : index
    %46 = vector.load %arg5[%c0_22, %c1, %c0_23, %c0_24] : memref<1x4x8x8xf32, #tpu.memory_space<vmem>>, vector<1x1x8x8xf32>
    %47 = vector.shape_cast %46 : vector<1x1x8x8xf32> to vector<8x8xf32>
    %48 = vector.shape_cast %45 : vector<8x8xf32> to vector<1x1x8x8xf32>
    tpu.vector_store %arg5[%c0_22, %c1, %c0_23, %c0_24], %48 {strides = array<i32>} : memref<1x4x8x8xf32, #tpu.memory_space<vmem>>, vector<1x1x8x8xf32>,
    %49 = arith.truncf %45 : vector<8x8xf32> to vector<8x8xbf16>
    %cst_25 = arith.constant dense<0.000000e+00> : vector<8x8xf32>
    %50 = tpu.matmul %49, %32, %cst_25 {dimension_numbers = #tpu.dot_dimension_numbers<[1], [0], [0], [1], [0, 0, 1, 1], [], []>} : vector<8x8xbf16>, vector<8x8xbf16>, vector<8x8xf32> -> vector<8x8xf32>
    %c0_26 = arith.constant 0 : index
    %c16 = arith.constant 16 : index
    %51 = vector.load %arg1[%c0_26, %c16] : memref<8x32xf32, #tpu.memory_space<vmem>>, vector<8x8xf32>
    %52 = arith.truncf %51 : vector<8x8xf32> to vector<8x8xbf16>
    %c0_27 = arith.constant 0 : index
    %c16_28 = arith.constant 16 : index
    %53 = vector.load %arg2[%c0_27, %c16_28] : memref<8x32xf32, #tpu.memory_space<vmem>>, vector<8x8xf32>
    %54 = arith.truncf %53 : vector<8x8xf32> to vector<8x8xbf16>
    %c0_29 = arith.constant 0 : index
    %c16_30 = arith.constant 16 : index
    %55 = vector.load %arg3[%c0_29, %c16_30] : memref<8x32xf32, #tpu.memory_space<vmem>>, vector<8x8xf32>
    %56 = arith.truncf %55 : vector<8x8xf32> to vector<8x8xbf16>
    %cst_31 = arith.constant dense<0.000000e+00> : vector<8x8xf32>
    %57 = tpu.matmul %52, %54, %cst_31 {dimension_numbers = #tpu.dot_dimension_numbers<[1], [1], [0], [0], [0, 0, 1, 0], [], []>} : vector<8x8xbf16>, vector<8x8xbf16>, vector<8x8xf32> -> vector<8x8xf32>
    %cst_32 = arith.constant -1.000000e+10 : f32
    %58 = vector.broadcast %cst_32 : f32 to vector<8x8xf32>
    %59 = arith.select %2, %57, %58 : vector<8x8xi1>, vector<8x8xf32>
    %cst_33 = arith.constant dense<0xFF800000> : vector<8xf32>
    %60 = vector.multi_reduction <maximumf>, %59, %cst_33 [1] : vector<8x8xf32> to vector<8xf32>
    %61 = vector.shape_cast %60 : vector<8xf32> to vector<8x1xf32>
    %62 = vector.broadcast %61 : vector<8x1xf32> to vector<8x8xf32>
    %63 = arith.subf %59, %62 : vector<8x8xf32>
    %64 = math.exp %63 : vector<8x8xf32>
    %cst_34 = arith.constant dense<0.000000e+00> : vector<8xf32>
    %65 = vector.multi_reduction <add>, %64, %cst_34 [1] : vector<8x8xf32> to vector<8xf32>
    %66 = vector.shape_cast %65 : vector<8xf32> to vector<8x1xf32>
    %67 = tpu.reciprocal %66 {approx = true} : vector<8x1xf32> -> vector<8x1xf32>
    %68 = vector.broadcast %67 : vector<8x1xf32> to vector<8x8xf32>
    %69 = arith.mulf %64, %68 : vector<8x8xf32>
    %c0_35 = arith.constant 0 : index
    %c2 = arith.constant 2 : index
    %c0_36 = arith.constant 0 : index
    %c0_37 = arith.constant 0 : index
    %70 = vector.load %arg5[%c0_35, %c2, %c0_36, %c0_37] : memref<1x4x8x8xf32, #tpu.memory_space<vmem>>, vector<1x1x8x8xf32>
    %71 = vector.shape_cast %70 : vector<1x1x8x8xf32> to vector<8x8xf32>
    %72 = vector.shape_cast %69 : vector<8x8xf32> to vector<1x1x8x8xf32>
    tpu.vector_store %arg5[%c0_35, %c2, %c0_36, %c0_37], %72 {strides = array<i32>} : memref<1x4x8x8xf32, #tpu.memory_space<vmem>>, vector<1x1x8x8xf32>,
    %73 = arith.truncf %69 : vector<8x8xf32> to vector<8x8xbf16>
    %cst_38 = arith.constant dense<0.000000e+00> : vector<8x8xf32>
    %74 = tpu.matmul %73, %56, %cst_38 {dimension_numbers = #tpu.dot_dimension_numbers<[1], [0], [0], [1], [0, 0, 1, 1], [], []>} : vector<8x8xbf16>, vector<8x8xbf16>, vector<8x8xf32> -> vector<8x8xf32>
    %c0_39 = arith.constant 0 : index
    %c24 = arith.constant 24 : index
    %75 = vector.load %arg1[%c0_39, %c24] : memref<8x32xf32, #tpu.memory_space<vmem>>, vector<8x8xf32>
    %76 = arith.truncf %75 : vector<8x8xf32> to vector<8x8xbf16>
    %c0_40 = arith.constant 0 : index
    %c24_41 = arith.constant 24 : index
    %77 = vector.load %arg2[%c0_40, %c24_41] : memref<8x32xf32, #tpu.memory_space<vmem>>, vector<8x8xf32>
    %78 = arith.truncf %77 : vector<8x8xf32> to vector<8x8xbf16>
    %c0_42 = arith.constant 0 : index
    %c24_43 = arith.constant 24 : index
    %79 = vector.load %arg3[%c0_42, %c24_43] : memref<8x32xf32, #tpu.memory_space<vmem>>, vector<8x8xf32>
    %80 = arith.truncf %79 : vector<8x8xf32> to vector<8x8xbf16>
    %cst_44 = arith.constant dense<0.000000e+00> : vector<8x8xf32>
    %81 = tpu.matmul %76, %78, %cst_44 {dimension_numbers = #tpu.dot_dimension_numbers<[1], [1], [0], [0], [0, 0, 1, 0], [], []>} : vector<8x8xbf16>, vector<8x8xbf16>, vector<8x8xf32> -> vector<8x8xf32>
    %cst_45 = arith.constant -1.000000e+10 : f32
    %82 = vector.broadcast %cst_45 : f32 to vector<8x8xf32>
    %83 = arith.select %2, %81, %82 : vector<8x8xi1>, vector<8x8xf32>
    %cst_46 = arith.constant dense<0xFF800000> : vector<8xf32>
    %84 = vector.multi_reduction <maximumf>, %83, %cst_46 [1] : vector<8x8xf32> to vector<8xf32>
    %85 = vector.shape_cast %84 : vector<8xf32> to vector<8x1xf32>
    %86 = vector.broadcast %85 : vector<8x1xf32> to vector<8x8xf32>
    %87 = arith.subf %83, %86 : vector<8x8xf32>
    %88 = math.exp %87 : vector<8x8xf32>
    %cst_47 = arith.constant dense<0.000000e+00> : vector<8xf32>
    %89 = vector.multi_reduction <add>, %88, %cst_47 [1] : vector<8x8xf32> to vector<8xf32>
    %90 = vector.shape_cast %89 : vector<8xf32> to vector<8x1xf32>
    %91 = tpu.reciprocal %90 {approx = true} : vector<8x1xf32> -> vector<8x1xf32>
    %92 = vector.broadcast %91 : vector<8x1xf32> to vector<8x8xf32>
    %93 = arith.mulf %88, %92 : vector<8x8xf32>
    %c0_48 = arith.constant 0 : index
    %c3 = arith.constant 3 : index
    %c0_49 = arith.constant 0 : index
    %c0_50 = arith.constant 0 : index
    %94 = vector.load %arg5[%c0_48, %c3, %c0_49, %c0_50] : memref<1x4x8x8xf32, #tpu.memory_space<vmem>>, vector<1x1x8x8xf32>
    %95 = vector.shape_cast %94 : vector<1x1x8x8xf32> to vector<8x8xf32>
    %96 = vector.shape_cast %93 : vector<8x8xf32> to vector<1x1x8x8xf32>
    tpu.vector_store %arg5[%c0_48, %c3, %c0_49, %c0_50], %96 {strides = array<i32>} : memref<1x4x8x8xf32, #tpu.memory_space<vmem>>, vector<1x1x8x8xf32>,
    %97 = arith.truncf %93 : vector<8x8xf32> to vector<8x8xbf16>
    %cst_51 = arith.constant dense<0.000000e+00> : vector<8x8xf32>
    %98 = tpu.matmul %97, %80, %cst_51 {dimension_numbers = #tpu.dot_dimension_numbers<[1], [0], [0], [1], [0, 0, 1, 1], [], []>} : vector<8x8xbf16>, vector<8x8xbf16>, vector<8x8xf32> -> vector<8x8xf32>
    %99 = tpu.concatenate %26, %50, %74, %98 in 1 : vector<8x8xf32>, vector<8x8xf32>, vector<8x8xf32>, vector<8x8xf32> -> vector<8x32xf32>
    %c0_52 = arith.constant 0 : index
    %c0_53 = arith.constant 0 : index
    %100 = vector.load %arg4[%c0_52, %c0_53] : memref<8x32xf32, #tpu.memory_space<vmem>>, vector<8x32xf32>
    tpu.vector_store %arg4[%c0_52, %c0_53], %99 {strides = array<i32>} : memref<8x32xf32, #tpu.memory_space<vmem>>, vector<8x32xf32>,
    return
  }
  func.func @transform_0(%arg0: i32) -> (i32, i32) {
    %c0_i32 = arith.constant 0 : i32
    %c0_i32_0 = arith.constant 0 : i32
    return %arg0, %c0_i32 : i32, i32
  }
  func.func @transform_1(%arg0: i32) -> (i32, i32) {
    %c0_i32 = arith.constant 0 : i32
    %c0_i32_0 = arith.constant 0 : i32
    return %arg0, %c0_i32 : i32, i32
  }
  func.func @transform_2(%arg0: i32) -> (i32, i32) {
    %c0_i32 = arith.constant 0 : i32
    %c0_i32_0 = arith.constant 0 : i32
    return %arg0, %c0_i32 : i32, i32
  }
  func.func @transform_3(%arg0: i32) -> (i32, i32) {
    %c0_i32 = arith.constant 0 : i32
    %c0_i32_0 = arith.constant 0 : i32
    return %arg0, %c0_i32 : i32, i32
  }
  func.func @transform_4(%arg0: i32) -> (i32, i32, i32, i32) {
    %c0_i32 = arith.constant 0 : i32
    %c0_i32_0 = arith.constant 0 : i32
    %c0_i32_1 = arith.constant 0 : i32
    %c0_i32_2 = arith.constant 0 : i32
    return %arg0, %c0_i32, %c0_i32_0, %c0_i32_1 : i32, i32, i32, i32
  }
}

</mosaic_0001>

<bundles_post_ra>
// kernel: encoding_block_forward.4
= control target key start
LH: loop header
LB: loop body
LE: loop exit
PB: predicated region body
PF: predicated region fallthrough
CT: control target
= control target key end

     0   :  { %10 = vsyncpa [#allocation3], 0  ;;  %s1344_s0 = inlined_call_operand.vmem [shape: f32[16,32], index: 0, kind: input, shape index: {}]   ;;  %s1345_s1 = inlined_call_operand.vmem [shape: f32[16,32], index: 1, kind: input, shape index: {}]   ;;  %s1346_s2 = inlined_call_operand.vmem [shape: f32[16,32], index: 2, kind: input, shape index: {}]   ;;  %s1347_s3 = inlined_call_operand.vmem [shape: f32[16,32], index: 3, kind: output, shape index: {0}]   ;;  %s1348_s4 = inlined_call_operand.hbm [shape: f32[2,4,8,8], index: 4, kind: output, shape index: {1}]  }
   0x1   :  { %12 = vsyncpa [#allocation3 + $0x1], 0  ;;  %s1125_s15 = smov 0   ;;  %s1127_s16 = smov 0  }
   0x2   :  { %s1129_s17 = smov 0   ;;  %s1131_s18 = smov 0  }
   0x3 LB: > { %s1146_s19 = sadd.s32 4294967295, %s1088_s18   ;;  %s874_s20 = sadd.s32 4294967294, %s1088_s18   ;;  %s1088_s18 = sphi %s1131_s18, %s1354_s18   ;;  %s1084_s17 = sphi %s1129_s17, %s1353_s17   ;;  %s1080_s16 = sphi %s1127_s16, %s1352_s16   ;;  %s1076_s15 = sphi %s1125_s15, %s1351_s15  }
   0x4   : > { %s1150_s21 = sadd.s32 1, %s1088_s18   ;;  %s129_s22 = sadd.s32 1, %s1084_s17 }
   0x5   : > { %s126_s23 = ssub.s32 %s1088_s18, %s1150_s21  ;;  %p139_p0 = scmp.ne.s32.totalorder %s1084_s17, %s1080_s16 }
   0x6   : > { %p127_p1 = scmp.eq.s32.totalorder %s126_s23, 0  ;;  %p140_p2 = scmp.eq.s32.totalorder %s1146_s19, 1 }
   0x7   : > { %p145_p3 = scmp.ne.s32.totalorder %s1080_s16, %s1076_s15  ;;  %p146_p4 = scmp.eq.s32.totalorder %s874_s20, 1 }
   0x8   : > { %s1161_s24 = scalar_select %p127_p1, %s1084_s17, %s129_s22  }
   0x9   : > { %p1163_p5 = por %p140_p2, %p139_p0  ;;  %p1167_p6 = por %p146_p4, %p145_p3 }
   0xa   : > { %p877_p7 = scmp.ge.s32.totalorder %s1088_s18, 1  ;;  %p185_p8 = scmp.lt.s32.totalorder %s1088_s18, 3 }
   0xc   : > { %p186_p9 = pnand %p877_p7, %p185_p8 }
   0xd   : > { %p222_p10 = scmp.lt.s32.totalorder (!%p186_p9), %s1146_s19, 1  ;;  %s1092_s9 = smov (!%p186_p9), 120  }
   0xe   : > { %189 = sbr.rel (%p186_p9) target bundleno = 1421 (0x58d), region = 32  ;;  %s1093_s10 = smov (!%p186_p9), 112  }
   0xf   : > { %s1094_s11 = smov (!%p186_p9), 104   ;;  %s219_s20 = sand.u32 (!%p186_p9), 1, %s1080_s16  }
  0x10   : > { %s878_s22 = sshll.u32 (!%p186_p9), %s219_s20, 5  ;;  %s1096_s29 = smov (!%p186_p9), 16  }
  0x11   : > { %s1226_s23 = scalar_lea.vmem (!%p186_p9), [#allocation2], %s878_s22  ;;  %s899_s30 = sshll.u32 (!%p186_p9), %s1146_s19, 9 }
  0x13   : > { %v1090_v0 = vmov 0.0   ;;  %vm1091_vm0 = vmmov 0   ;;  %s223_s27 = scalar_select %p222_p10, %s1146_s19, 1  ;;  %vm250_vm1 = vcmask 64512   ;;  %v239_v6 = vlaneseq }
  0x14   : > { %916 = vmatprep.subr.bf16.mxu0 %v1090_v0  ;;  %918 = vmatprep.mubr.msk.bf16.mxu0 %vm1091_vm0, %v1090_v0  ;;  %vm314_vm3 = vcmask 1043456   ;;  %s1097_s19 = smov [#allocation2]  }
  0x15   : > { %922 = vmatprep.subr.bf16.mxu1 %v1090_v0  ;;  %924 = vmatprep.mubr.msk.bf16.mxu1 %vm1091_vm0, %v1090_v0  ;;  %s1181_s28 = sshll.u32 %s223_s27, 3  ;;  %v1196_v7 = vshrl.u32 %v239_v6, 7  ;;  %v1198_v8 = vand.u32 127, %v239_v6  ;;  %s1095_s27 = smov 8  }
  0x16   : > { %s229_s5 = scalar_lea.vmem %s1345_s1, %s1181_s28  ;;  %s225_s8 = scalar_lea.vmem %s1344_s0, %s1181_s28 }
  0x17   : > { %v246_v1 = vld [vmem:[%s229_s5] sm:$0xff]  ;;  %vm243_vm2 = vcmp.ge.s32.totalorder %v1196_v7, %v1198_v8  ;;  %s233_s14 = scalar_lea.vmem %s1346_s2, %s1181_s28  ;;  %s764_s5 = sshll.u32 %s1226_s23, 4  ;;  %s1293_s5 = int_to_ptr.vmem [resolvable:$true] %s764_s5 }
  0x18   : > { %v247_v2 = vpack.c.bf16 %v246_v1, %v246_v1  ;;  %v244_v4 = vld [vmem:[%s225_s8] sm:$0xff]  ;;  %s1291_s8 = scalar_lea.hbm %s1348_s4, %s899_s30 }
  0x19   : > { %v245_v5 = vpack.c.bf16 %v244_v4, %v244_v4  ;;  %v248_v20 = vld [vmem:[%s233_s14] sm:$0xff] }
  0x1a   : > { %v255_v3 = vsel %vm250_vm1, %v247_v2, 0  ;;  %368 = vrot.lane.b32.xlu1 %v247_v2, %s1092_s9  ;;  %v1216_v21 = vpack.c.bf16 %v248_v20, %v248_v20 }
  0x1b   : > { %917 = vmatpush3.bf16.xpose.msra.mxu0 %v255_v3 }
  0x1c   : > { %934 = vmatprep.subr.bf16.mxu0 %v1090_v0  ;;  %v316_v22 = vsel %vm314_vm3, %v1216_v21, 0 }
  0x1d   : > { %923 = vmatpush3.bf16.msra.mxu1 %v316_v22 }
  0x1e   : > { %365 = vrot.lane.b32.xlu1 %v245_v5, %s1092_s9  ;;  %928 = vmatprep.subr.bf16.mxu1 %v1090_v0 }
  0x22   : > { %919 = vmatmul.mubr.msk.bf16.vlgmr.msra.gmra.mxu0 %vm250_vm1, %v245_v5  ;;  %487 = vrot.lane.b32.xlu1 %v245_v5, %s1093_s10 }
  0x23   : > { %936 = vmatprep.mubr.msk.bf16.mxu0 %vm1091_vm0, %v1090_v0 }
  0x26   : > { %612 = vrot.lane.b32.xlu1 %v247_v2, %s1094_s11 }
  0x2a   : > { %609 = vrot.lane.b32.xlu1 %v245_v5, %s1094_s11 }
  0x8c   : > { %v369_v25 = vpop.permute.xlu1 %368 }
  0x8d   : > { %v374_v27 = vsel %vm250_vm1, %v369_v25, 0 }
  0x90   : > { %v366_v29 = vpop.permute.xlu1 %365 }
  0x94   : > { %v488_v31 = vpop.permute.xlu1 %487 }
  0x98   : > { %v613_v33 = vpop.permute.xlu1 %612 }
  0x99   : > { %v618_v34 = vsel %vm250_vm1, %v613_v33, 0 }
  0x9c   : > { %v610_v35 = vpop.permute.xlu1 %609 }
  0xe2   : > { %v291_v9 = vpop.f32.mrf.mxu0 }
  0xe3   : > { %v297_v10 = vsel %vm243_vm2, %v291_v9, -1e+10 }
  0xe4   : > { %v920_v11 = vpop.f32.mrf.mxu0  ;;  %v298_v12 = vsel %vm250_vm1, %v297_v10, -inf }
  0xe5   : > { %299 = vmax.xlane.f32.xlu0 %v298_v12 }
  0xe6   : > { %v294_v13 = vpop.f32.mrf.mxu0 }
  0xe8   : > { %v921_v14 = vpop.f32.mrf.mxu0 }
 0x16e   : > { %v300_v15 = vpop.xlane.xlu0 %299 }
 0x16f   : > { %v301_v16 = vsub.f32 %v297_v10, %v300_v15 }
 0x171   : > { %v302_v17 = vmul.f32 1.442695, %v301_v16 }
 0x173   : > { %1012 = vpow2.f32 %v302_v17 }
 0x180   : > { %v1013_v18 = vpop.eup %1012 }
 0x181   : > { %v304_v19 = vsel %vm250_vm1, %v1013_v18, 0.0 }
 0x182   : > { %305 = vadd.xlane.f32.xlu0 %v304_v19 }
 0x198   : > { %490 = vrot.lane.b32.xlu0 %v247_v2, %s1093_s10 }
 0x20b   : > { %v306_v23 = vpop.xlane.xlu0 %305 }
 0x20c   : > { %1014 = vrcp.f32 %v306_v23 }
 0x20f   : > { %v491_v30 = vpop.permute.xlu0 %490 }
 0x210   : > { %v496_v32 = vsel %vm250_vm1, %v491_v30, 0 }
 0x219   : > { %v1015_v24 = vpop.eup %1014 }
 0x21a   : > { %v308_v26 = vmul.f32 %v1015_v24, %v1013_v18 }
 0x21c   : > { %309 = vst.msk [vmem:[%s1226_s23] sm:$0xff] %vm250_vm1, %v308_v26  ;;  %v310_v28 = vpack.c.bf16 %v308_v26, %v308_v26 }
 0x21e   : > { %925 = vmatmul.mubr.msk.bf16.vlgmr.msra.gmra.mxu1 %vm250_vm1, %v310_v28 }
 0x21f   : > { %929 = vmatpush3.bf16.xpose.msra.mxu1 %v374_v27  ;;  %930 = vmatprep.mubr.msk.bf16.mxu1 %vm1091_vm0, %v1090_v0 }
 0x220   : > { %940 = vmatprep.subr.bf16.mxu1 %v1090_v0 }
 0x226   : > { %931 = vmatmul.mubr.msk.bf16.vlgmr.msra.gmra.mxu1 %vm250_vm1, %v366_v29 }
 0x227   : > { %941 = vmatpush3.bf16.xpose.msra.mxu1 %v496_v32  ;;  %942 = vmatprep.mubr.msk.bf16.mxu1 %vm1091_vm0, %v1090_v0 }
 0x228   : > { %952 = vmatprep.subr.bf16.mxu1 %v1090_v0 }
 0x22e   : > { %943 = vmatmul.mubr.msk.bf16.vlgmr.msra.gmra.mxu1 %vm250_vm1, %v488_v31 }
 0x22f   : > { %953 = vmatpush3.bf16.xpose.msra.mxu1 %v618_v34  ;;  %954 = vmatprep.mubr.msk.bf16.mxu1 %vm1091_vm0, %v1090_v0 }
 0x236   : > { %955 = vmatmul.mubr.msk.bf16.vlgmr.msra.gmra.mxu1 %vm250_vm1, %v610_v35 }
 0x2de   : > { %v1244_v36 = vpop.f32.mrf.mxu1 }
 0x2e0   : > { %v926_v37 = vpop.f32.mrf.mxu1 }
 0x2e2   : > { %v355_v38 = vpop.f32.mrf.mxu1 }
 0x2e4   : > { %v927_v39 = vpop.f32.mrf.mxu1 }
 0x2e6   : > { %v410_v40 = vpop.f32.mrf.mxu1 }
 0x2e7   : > { %v416_v41 = vsel %vm243_vm2, %v410_v40, -1e+10 }
 0x2e8   : > { %v932_v42 = vpop.f32.mrf.mxu1  ;;  %v417_v43 = vsel %vm250_vm1, %v416_v41, -inf }
 0x2e9   : > { %418 = vmax.xlane.f32.xlu1 %v417_v43 }
 0x2ea   : > { %v413_v44 = vpop.f32.mrf.mxu1 }
 0x2ec   : > { %v933_v45 = vpop.f32.mrf.mxu1 }
 0x2ee   : > { %v532_v46 = vpop.f32.mrf.mxu1 }
 0x2ef   : > { %v538_v47 = vsel %vm243_vm2, %v532_v46, -1e+10 }
 0x2f0   : > { %v944_v48 = vpop.f32.mrf.mxu1  ;;  %v539_v49 = vsel %vm250_vm1, %v538_v47, -inf }
 0x2f1   : > { %540 = vmax.xlane.f32.xlu0 %v539_v49 }
 0x2f2   : > { %v535_v50 = vpop.f32.mrf.mxu1 }
 0x2f4   : > { %v945_v51 = vpop.f32.mrf.mxu1 }
 0x2f6   : > { %v654_v52 = vpop.f32.mrf.mxu1 }
 0x2f7   : > { %v660_v53 = vsel %vm243_vm2, %v654_v52, -1e+10 }
 0x2f8   : > { %v661_v54 = vsel %vm250_vm1, %v660_v53, -inf  ;;  %v956_v55 = vpop.f32.mrf.mxu1 }
 0x2f9   : > { %662 = vmax.xlane.f32.xlu1 %v661_v54 }
 0x2fa   : > { %v657_v56 = vpop.f32.mrf.mxu1 }
 0x2fc   : > { %v957_v57 = vpop.f32.mrf.mxu1 }
 0x372   : > { %v419_v58 = vpop.xlane.xlu1 %418 }
 0x373   : > { %v420_v59 = vsub.f32 %v416_v41, %v419_v58 }
 0x375   : > { %v421_v60 = vmul.f32 1.442695, %v420_v59 }
 0x377   : > { %1016 = vpow2.f32 %v421_v60 }
 0x37a   : > { %v541_v61 = vpop.xlane.xlu0 %540 }
 0x37b   : > { %v542_v62 = vsub.f32 %v538_v47, %v541_v61 }
 0x37d   : > { %v543_v63 = vmul.f32 1.442695, %v542_v62 }
 0x37f   : > { %1018 = vpow2.f32 %v543_v63 }
 0x382   : > { %v663_v5 = vpop.xlane.xlu1 %662 }
 0x383   : > { %v664_v6 = vsub.f32 %v660_v53, %v663_v5 }
 0x384   : > { %v1017_v1 = vpop.eup %1016 }
 0x385   : > { %v423_v2 = vsel %vm250_vm1, %v1017_v1, 0.0  ;;  %v665_v7 = vmul.f32 1.442695, %v664_v6 }
 0x386   : > { %424 = vadd.xlane.f32.xlu1 %v423_v2 }
 0x387   : > { %1020 = vpow2.f32 %v665_v7 }
 0x38c   : > { %v1019_v3 = vpop.eup %1018 }
 0x38d   : > { %v545_v4 = vsel %vm250_vm1, %v1019_v3, 0.0 }
 0x38e   : > { %546 = vadd.xlane.f32.xlu0 %v545_v4 }
 0x394   : > { %v1021_v8 = vpop.eup %1020 }
 0x395   : > { %v667_v9 = vsel %vm250_vm1, %v1021_v8, 0.0 }
 0x397   : > { %554 = vrot.lane.b32.xlu1 %v1216_v21, %s1093_s10  ;;  %s1028_s10 = scalar_lea.vmem %s1293_s5, 512 }
 0x398   : > { %p1029_p11 = scmp.ne.s32.totalorder %s1293_s5, %s1028_s10 }
 0x39a   : > { %p1030_p12 = pnand %p1029_p11, %p1163_p5 }
 0x39c   : > { %p1031_p13 = pneg %p1030_p12 }
 0x3a4   : > { %432 = vrot.lane.b32.xlu0 %v1216_v21, %s1092_s9  ;;  %s1297_s9 = scalar_lea.sflag [#allocation3], %s219_s20 }
 0x3bb   : > { %668 = vadd.xlane.f32.xlu1 %v667_v9 }
 0x3cc   : > { %676 = vrot.lane.b32.xlu1 %v1216_v21, %s1094_s11  ;;  %s1032_s11 = sshll.u32 %s1097_s19, 4  ;;  %s1033_s11 = int_to_ptr.vmem [resolvable:$false] %s1032_s11 }
 0x3cd   : > { %s1034_s12 = scalar_lea.vmem %s1033_s11, 1024  ;;  %p1035_p0 = scmp.lt.s32.totalorder %s1293_s5, %s1033_s11 }
 0x3ce   : > { %p1036_p1 = scmp.lt.s32.totalorder %s1034_s12, %s1028_s10 }
 0x3d0   : > { %p1037_p2 = por %p1036_p1, %p1035_p0 }
 0x3d2   : > { %p1038_p3 = pnand %p1037_p2, %p1031_p13 }
 0x40f   : > { %v425_v10 = vpop.xlane.xlu1 %424 }
 0x410   : > { %1022 = vrcp.f32 %v425_v10 }
 0x413   : > { %v555_v16 = vpop.permute.xlu1 %554 }
 0x414   : > { %v560_v18 = vsel %vm314_vm3, %v555_v16, 0 }
 0x417   : > { %v547_v11 = vpop.xlane.xlu0 %546 }
 0x418   : > { %1024 = vrcp.f32 %v547_v11 }
 0x41b   : > { %v433_v12 = vpop.permute.xlu0 %432 }
 0x41c   : > { %v438_v13 = vsel %vm314_vm3, %v433_v12, 0 }
 0x41d   : > { %v1023_v14 = vpop.eup %1022  ;;  %935 = vmatpush3.bf16.msra.mxu0 %v438_v13 }
 0x41e   : > { %946 = vmatprep.subr.bf16.mxu0 %v1090_v0  ;;  %v427_v15 = vmul.f32 %v1023_v14, %v1017_v1 }
 0x420   : > { %886 = vst.msk [vmem:[%s1226_s23 + $0x8] sm:$0xff] %vm250_vm1, %v427_v15  ;;  %v430_v17 = vpack.c.bf16 %v427_v15, %v427_v15 }
 0x422   : > { %937 = vmatmul.mubr.msk.bf16.vlgmr.msra.gmra.mxu0 %vm250_vm1, %v430_v17 }
 0x423   : > { %947 = vmatpush3.bf16.msra.mxu0 %v560_v18  ;;  %948 = vmatprep.mubr.msk.bf16.mxu0 %vm1091_vm0, %v1090_v0 }
 0x424   : > { %958 = vmatprep.subr.bf16.mxu0 %v1090_v0 }
 0x425   : > { %v1025_v19 = vpop.eup %1024 }
 0x426   : > { %v549_v20 = vmul.f32 %v1025_v19, %v1019_v3 }
 0x428   : > { %889 = vst.msk [vmem:[%s1226_s23 + $0x10] sm:$0xff] %vm250_vm1, %v549_v20  ;;  %v552_v21 = vpack.c.bf16 %v549_v20, %v549_v20 }
 0x42a   : > { %949 = vmatmul.mubr.msk.bf16.vlgmr.msra.gmra.mxu0 %vm250_vm1, %v552_v21 }
 0x42b   : > { %960 = vmatprep.mubr.msk.bf16.mxu0 %vm1091_vm0, %v1090_v0 }
 0x444   : > { %v669_v22 = vpop.xlane.xlu1 %668 }
 0x445   : > { %1026 = vrcp.f32 %v669_v22 }
 0x448   : > { %v677_v23 = vpop.permute.xlu1 %676 }
 0x449   : > { %v682_v24 = vsel %vm314_vm3, %v677_v23, 0 }
 0x44a   : > { %959 = vmatpush3.bf16.msra.mxu0 %v682_v24 }
 0x452   : > { %v1027_v25 = vpop.eup %1026 }
 0x453   : > { %v671_v26 = vmul.f32 %v1027_v25, %v1021_v8 }
 0x455   : > { %892 = vst.msk [vmem:[%s1226_s23 + $0x18] sm:$0xff] %vm250_vm1, %v671_v26  ;;  %v674_v27 = vpack.c.bf16 %v671_v26, %v671_v26 }
 0x457   : > { %961 = vmatmul.mubr.msk.bf16.vlgmr.msra.gmra.mxu0 %vm250_vm1, %v674_v27 }
 0x4e2   : > { %v474_v28 = vpop.f32.mrf.mxu0 }
 0x4e3   : > { %725 = vrot.lane.b32.xlu0 %v474_v28, %s1095_s27 }
 0x4e4   : > { %v938_v0 = vpop.f32.mrf.mxu0 }
 0x4e6   : > { %v477_v29 = vpop.f32.mrf.mxu0 }
 0x4e8   : > { %v939_v30 = vpop.f32.mrf.mxu0 }
 0x4ea   : > { %v596_v31 = vpop.f32.mrf.mxu0 }
 0x4eb   : > { %729 = vrot.lane.b32.xlu1 %v596_v31, %s1096_s29 }
 0x4ec   : > { %v950_v32 = vpop.f32.mrf.mxu0 }
 0x4ee   : > { %v599_v33 = vpop.f32.mrf.mxu0 }
 0x4f0   : > { %v951_v34 = vpop.f32.mrf.mxu0 }
 0x4f1   : > { %1041 = shalt.err (!%p1038_p3)
}
 0x4f2   : > { %s1042_s13 = scalar_lea.hbm %s1291_s8, 512  ;;  %s1046_s22 = scalar_lea.hbm %s1348_s4, 1024 }
 0x4f3   : > { %p1043_p4 = scmp.ne.s32.totalorder %s1291_s8, %s1042_s13  ;;  %p1047_p9 = scmp.lt.s32.totalorder %s1291_s8, %s1348_s4 }
 0x4f4   : > { %p1048_p10 = scmp.lt.s32.totalorder %s1046_s22, %s1042_s13 }
 0x4f5   : > { %p1044_p7 = pnand %p1043_p4, %p1163_p5 }
 0x4f6   : > { %p1049_p11 = por %p1048_p10, %p1047_p9 }
 0x4f7   : > { %p1045_p8 = pneg %p1044_p7 }
 0x4f9   : > { %p1050_p12 = pnand %p1049_p11, %p1045_p8 }
 0x4fb   : > { %1053 = shalt.err (!%p1050_p12)
}
 0x4fc   : > { %s1098_s30 = smov 128   ;;  %s1099_s6 = smov 24   ;;  %vm737_vm4 = vcmask 130048   ;;  %vm739_vm5 = vcmask 195584   ;;  %vm741_vm6 = vcmask 261120  }
 0x4fd   : > { %964 = dma.vmem_to_hbm [thread:$0]  (%p1163_p5), %s1293_s5, 512, %s1291_s8, %s1297_s9, %s1098_s30, %s1098_s30, %s1095_s27  }
 0x4fe   : > { %s237_s10 = scalar_lea.vmem %s1347_s3, %s1181_s28 }
 0x517   : > { %v718_v35 = vpop.f32.mrf.mxu0 }
 0x518   : > { %733 = vrot.lane.b32.xlu0 %v718_v35, %s1099_s6 }
 0x519   : > { %v962_v37 = vpop.f32.mrf.mxu0 }
 0x51b   : > { %v721_v38 = vpop.f32.mrf.mxu0 }
 0x51d   : > { %v963_v39 = vpop.f32.mrf.mxu0 }
 0x555   : > { %v726_v40 = vpop.permute.xlu0 %725 }
 0x556   : > { %v736_v42 = vsel %vm250_vm1, %v1244_v36, %v726_v40 }
 0x55d   : > { %v730_v41 = vpop.permute.xlu1 %729 }
 0x55e   : > { %v738_v43 = vsel %vm737_vm4, %v736_v42, %v730_v41 }
 0x58a   : > { %v734_v44 = vpop.permute.xlu0 %733 }
 0x58b   : > { %v740_v45 = vsel %vm739_vm5, %v738_v43, %v734_v44 }
 0x58c   : > { %742 = vst.msk [vmem:[%s237_s10] sm:$0xff] %vm741_vm6, %v740_v45 }
 0x58d PF: > { %p970_p5 = scmp.ge.s32.totalorder %s1088_s18, 2  ;;  %s786_s27 = sand.u32 1, %s1076_s15  }
 0x58e   : > { %s787_s5 = scalar_lea.sflag [#allocation3], %s786_s27 }
 0x58f   : > { %p967_p13 = pnand %p970_p5, %p1167_p6 }
 0x591   : > { %p968_p0 = pneg %p967_p13 }
 0x593   : > { %1071 = dma.done.wait (%p968_p0), %s787_s5, 512  }
 0x594   : > { %1073 = vsyncadd (%p968_p0), %s787_s5, 4294966784  ;;  %p15_p1 = scmp.ge.s32.totalorder %s1150_s21, 4   ;;  %s1351_s15 = smov %s1080_s16 }
 0x595   : > { %s1352_s16 = smov %s1084_s17  ;;  %s1353_s17 = smov %s1161_s24 }
 0x596   : > { %s1354_s18 = smov %s1150_s21  ;;  %17 = sbr.rel (!%p15_p1) target bundleno = 3 (0x3), region = 88 }
 0x59b   :  { %792 = vsyncpa [#allocation3], 1 }
 0x59c   :  { %794 = vsyncpa [#allocation3 + $0x1], 1 }

// kernel: encoding_block_forward.5
= control target key start
LH: loop header
LB: loop body
LE: loop exit
PB: predicated region body
PF: predicated region fallthrough
CT: control target
= control target key end

     0   :  { %vm37_vm0 = vcmask 261120   ;;  %s528_s0 = inlined_call_operand.vmem [shape: f32[16,32], index: 0, kind: input, shape index: {}]   ;;  %s529_s1 = inlined_call_operand.vmem [shape: f32[16,32], index: 1, kind: input, shape index: {}]   ;;  %s530_s2 = inlined_call_operand.vmem [shape: f32[1,32], index: 2, kind: input, shape index: {}]   ;;  %s531_s3 = inlined_call_operand.vmem [shape: f32[1,32], index: 3, kind: input, shape index: {}]   ;;  %s532_s4 = inlined_call_operand.vmem [shape: bf16[32,128], index: 4, kind: input, shape index: {}]   ;;  %s533_s5 = inlined_call_operand.vmem [shape: f32[1,128], index: 5, kind: input, shape index: {}]   ;;  %s534_s6 = inlined_call_operand.vmem [shape: bf16[128,32], index: 6, kind: input, shape index: {}]   ;;  %s535_s7 = inlined_call_operand.vmem [shape: f32[1,32], index: 7, kind: input, shape index: {}]   ;;  %s536_s8 = inlined_call_operand.hbm [shape: f32[16,32], index: 8, kind: output, shape index: {}]  }
   0x1   :  { %v31_v0 = vld [vmem:[%s528_s0] sm:$0xff]  ;;  %v32_v2 = vld [vmem:[%s528_s0 + $0x8] sm:$0xff] }
   0x2   :  { %v33_v1 = vld [vmem:[%s529_s1] sm:$0xff]  ;;  %v34_v4 = vld [vmem:[%s529_s1 + $0x8] sm:$0xff] }
   0x3   :  { %v463_v3 = vadd.f32 %v33_v1, %v31_v0  ;;  %v468_v5 = vadd.f32 %v34_v4, %v32_v2 }
   0x5   :  { %v38_v6 = vsel %vm37_vm0, %v463_v3, 0.0  ;;  %v41_v7 = vsel %vm37_vm0, %v468_v5, 0.0 }
   0x6   :  { %39 = vadd.xlane.f32.xlu0 %v38_v6 }
   0xa   :  { %42 = vadd.xlane.f32.xlu0 %v41_v7 }
   0xb   :  { %13 = vsyncpa [#allocation3], 0  ;;  %v364_v18 = vld [vmem:[%s532_s4 + $0x8] sm:$0xff]   ;;  %v404_v19 = vmov 0.0   ;;  %vm405_vm1 = vmmov 0   ;;  %v365_v20 = vld [vmem:[%s532_s4] sm:$0xff]  }
   0xc   :  { %331 = vmatprep.subr.bf16.mxu0 %v404_v19  ;;  %335 = vmatprep.mubr.msk.bf16.mxu0 %vm405_vm1, %v404_v19  ;;  %v304_v29 = vld [vmem:[%s530_s2] ss:$0 sm:$0xff]  ;;  %v366_v38 = vld [vmem:[%s534_s6 + $0x38] sm:$0xff]   ;;  %v367_v39 = vld [vmem:[%s534_s6 + $0x30] sm:$0xff]   ;;  %s406_s12 = smov [#allocation2]  }
   0xd   :  { %332 = vmatpush3.bf16.msra.mxu0 %v364_v18  ;;  %339 = vmatprep.subr.bf16.mxu1 %v404_v19  ;;  %v305_v33 = vld [vmem:[%s531_s3] ss:$0 sm:$0xff]  ;;  %v368_v40 = vld [vmem:[%s534_s6 + $0x28] sm:$0xff]   ;;  %v370_v42 = vld [vmem:[%s534_s6 + $0x18] sm:$0xff]   ;;  %s293_s0 = sshll.u32 %s406_s12, 4  ;;  %s294_s0 = int_to_ptr.vmem [resolvable:$true] %s293_s0 }
   0xe   :  { %333 = vmatprep.subr.bf16.mxu0 %v404_v19  ;;  %355 = vmatprep.mubr.msk.bf16.mxu1 %vm405_vm1, %v404_v19  ;;  %v369_v41 = vld [vmem:[%s534_s6 + $0x20] sm:$0xff]   ;;  %v371_v43 = vld [vmem:[%s534_s6 + $0x10] sm:$0xff]   ;;  %v372_v44 = vld [vmem:[%s534_s6 + $0x8] sm:$0xff]   ;;  %s382_s1 = scalar_lea.vmem %s294_s0, 256  ;;  %p387_p1 = scmp.lt.s32.totalorder %s294_s0, %s294_s0 }
   0xf   :  { %340 = vmatpush3.bf16.msra.mxu1 %v366_v38  ;;  %v373_v45 = vld [vmem:[%s534_s6] sm:$0xff]   ;;  %p383_p0 = scmp.ne.s32.totalorder %s294_s0, %s382_s1  ;;  %p388_p2 = scmp.lt.s32.totalorder %s382_s1, %s382_s1 }
  0x10   :  { %341 = vmatprep.subr.bf16.mxu1 %v404_v19  ;;  %v306_v46 = vld [vmem:[%s533_s5] ss:$0 sm:$0xff] }
  0x11   :  { %334 = vmatpush3.bf16.msra.mxu0 %v365_v20  ;;  %p389_p3 = por %p388_p2, %p387_p1 }
  0x13   :  { %342 = vmatpush3.bf16.msra.mxu1 %v367_v39  ;;  %p390_p4 = pnand %p389_p3, %p383_p0 }
  0x14   :  { %343 = vmatprep.subr.bf16.mxu1 %v404_v19 }
  0x17   :  { %344 = vmatpush3.bf16.msra.mxu1 %v368_v40 }
  0x18   :  { %345 = vmatprep.subr.bf16.mxu1 %v404_v19 }
  0x1b   :  { %346 = vmatpush3.bf16.msra.mxu1 %v369_v41 }
  0x1c   :  { %347 = vmatprep.subr.bf16.mxu1 %v404_v19 }
  0x1f   :  { %348 = vmatpush3.bf16.msra.mxu1 %v370_v42 }
  0x20   :  { %349 = vmatprep.subr.bf16.mxu1 %v404_v19 }
  0x23   :  { %350 = vmatpush3.bf16.msra.mxu1 %v371_v43 }
  0x24   :  { %351 = vmatprep.subr.bf16.mxu1 %v404_v19 }
  0x27   :  { %352 = vmatpush3.bf16.msra.mxu1 %v372_v44 }
  0x28   :  { %353 = vmatprep.subr.bf16.mxu1 %v404_v19 }
  0x2b   :  { %354 = vmatpush3.bf16.msra.mxu1 %v373_v45 }
  0x8f   :  { %v40_v8 = vpop.xlane.xlu0 %39 }
  0x90   :  { %v45_v9 = vmul.f32 0.03125, %v40_v8 }
  0x92   :  { %v47_v10 = vsub.f32 %v463_v3, %v45_v9 }
  0x93   :  { %v43_v11 = vpop.xlane.xlu0 %42 }
  0x94   :  { %v46_v12 = vmul.f32 0.03125, %v43_v11  ;;  %v49_v13 = vmul.f32 %v47_v10, %v47_v10  ;;  %v318_v11 = vld [vmem:[%s535_s7] ss:$0 sm:$0xff] }
  0x96   :  { %v48_v14 = vsub.f32 %v468_v5, %v46_v12  ;;  %v51_v15 = vsel %vm37_vm0, %v49_v13, 0.0 }
  0x97   :  { %52 = vadd.xlane.f32.xlu1 %v51_v15 }
  0x98   :  { %v50_v16 = vmul.f32 %v48_v14, %v48_v14 }
  0x9a   :  { %v54_v17 = vsel %vm37_vm0, %v50_v16, 0.0 }
  0x9b   :  { %55 = vadd.xlane.f32.xlu1 %v54_v17 }
 0x120   :  { %v53_v21 = vpop.xlane.xlu1 %52 }
 0x121   :  { %v57_v22 = vmul.f32 0.03125, %v53_v21 }
 0x123   :  { %v59_v23 = vadd.f32 1e-12, %v57_v22 }
 0x124   :  { %v56_v24 = vpop.xlane.xlu1 %55 }
 0x125   :  { %374 = vrsqrt.f32 %v59_v23  ;;  %v58_v25 = vmul.f32 0.03125, %v56_v24 }
 0x127   :  { %v60_v26 = vadd.f32 1e-12, %v58_v25 }
 0x129   :  { %376 = vrsqrt.f32 %v60_v26 }
 0x132   :  { %v375_v27 = vpop.eup %374 }
 0x133   :  { %v63_v28 = vmul.f32 %v375_v27, %v47_v10 }
 0x135   :  { %v72_v32 = vmul.f32 %v304_v29, %v63_v28 }
 0x136   :  { %v377_v30 = vpop.eup %376 }
 0x137   :  { %v64_v31 = vmul.f32 %v377_v30, %v48_v14  ;;  %v81_v35 = vadd.f32 %v305_v33, %v72_v32 }
 0x139   :  { %v73_v34 = vmul.f32 %v304_v29, %v64_v31 }
 0x13b   :  { %v82_v36 = vadd.f32 %v305_v33, %v73_v34 }
 0x13d   :  { %v83_v37 = vpack.c.bf16 %v82_v36, %v81_v35 }
 0x13f   :  { %336 = vmatmul.mubr.msk.bf16.vlgmr.msra.gmra.mxu0 %vm37_vm0, %v83_v37 }
 0x1ff   :  { %v144_v47 = vpop.f32.mrf.mxu0 }
 0x200   :  { %v145_v48 = vadd.f32 %v306_v46, %v144_v47 }
 0x201   :  { %v337_v49 = vpop.f32.mrf.mxu0 }
 0x202   :  { %v153_v50 = vmul.f32 0.044715, %v145_v48  ;;  %v151_v2 = vmul.f32 0.5, %v145_v48 }
 0x203   :  { %v147_v51 = vpop.f32.mrf.mxu0 }
 0x204   :  { %v155_v52 = vmul.f32 %v153_v50, %v145_v48  ;;  %v148_v53 = vadd.f32 %v306_v46, %v147_v51 }
 0x205   :  { %v338_v54 = vpop.f32.mrf.mxu0 }
 0x206   :  { %v157_v55 = vmul.f32 %v155_v52, %v145_v48  ;;  %v154_v56 = vmul.f32 0.044715, %v148_v53  ;;  %v152_v4 = vmul.f32 0.5, %v148_v53 }
 0x208   :  { %v156_v57 = vmul.f32 %v154_v56, %v148_v53  ;;  %v159_v58 = vadd.f32 %v157_v55, %v145_v48 }
 0x20a   :  { %v158_v59 = vmul.f32 %v156_v57, %v148_v53  ;;  %v161_v60 = vmul.f32 0.7978846, %v159_v58 }
 0x20c   :  { %v160_v61 = vadd.f32 %v158_v59, %v148_v53  ;;  %378 = vtanh.f32 %v161_v60 }
 0x20e   :  { %v162_v62 = vmul.f32 0.7978846, %v160_v61 }
 0x210   :  { %380 = vtanh.f32 %v162_v62 }
 0x219   :  { %v379_v63 = vpop.eup %378 }
 0x21a   :  { %v165_v0 = vadd.f32 1.0, %v379_v63 }
 0x21c   :  { %v167_v7 = vmul.f32 %v165_v0, %v151_v2 }
 0x21d   :  { %v381_v1 = vpop.eup %380 }
 0x21e   :  { %v166_v6 = vadd.f32 1.0, %v381_v1 }
 0x220   :  { %v168_v8 = vmul.f32 %v166_v6, %v152_v4 }
 0x222   :  { %v169_v9 = vpack.c.bf16 %v168_v8, %v167_v7 }
 0x224   :  { %356 = vmatmul.mubr.bf16.vlgmr.msra.gmra.mxu1 %v169_v9 }
 0x2e4   :  { %v268_v10 = vpop.f32.mrf.mxu1 }
 0x2e5   :  { %v275_v12 = vadd.f32 %v268_v10, %v463_v3 }
 0x2e6   :  { %v357_v13 = vpop.f32.mrf.mxu1 }
 0x2e7   :  { %v284_v14 = vadd.f32 %v318_v11, %v275_v12 }
 0x2e8   :  { %v271_v15 = vpop.f32.mrf.mxu1 }
 0x2e9   :  { %286 = vst.msk [vmem:[#allocation2] sm:$0xff] %vm37_vm0, %v284_v14  ;;  %v276_v16 = vadd.f32 %v271_v15, %v468_v5 }
 0x2ea   :  { %v358_v17 = vpop.f32.mrf.mxu1 }
 0x2eb   :  { %v285_v18 = vadd.f32 %v318_v11, %v276_v16 }
 0x2ed   :  { %287 = vst.msk [vmem:[#allocation2 + $0x8] sm:$0xff] %vm37_vm0, %v285_v18 }
 0x2ee   :  { %393 = shalt.err (!%p390_p4)
}
 0x2ef   :  { %s407_s7 = smov 128   ;;  %s408_s13 = smov 8  }
 0x2f0   :  { %299 = dma.vmem_to_hbm [thread:$0]  %s294_s0, 256, %s536_s8, [#allocation3], %s407_s7, %s407_s7, %s408_s13  }
 0x2f1   :  { %402 = dma.done.wait [#allocation3], 256  }
 0x2f2   :  { %403 = vsyncadd [#allocation3], 4294967040 }
 0x2f3   :  { %303 = vsyncpa [#allocation3], 1 }

// kernel: encoding_block_forward.3
= control target key start
LH: loop header
LB: loop body
LE: loop exit
PB: predicated region body
PF: predicated region fallthrough
CT: control target
= control target key end

     0   :  { %vm35_vm0 = vcmask 261120   ;;  %v310_v4 = vmov 0.0   ;;  %vm311_vm1 = vmmov 0   ;;  %s312_s28 = smov 32   ;;  %s314_s14 = smov 96   ;;  %s436_s0 = inlined_call_operand.vmem [shape: f32[16,32], index: 0, kind: input, shape index: {}]   ;;  %s437_s6 = inlined_call_operand.vmem [shape: bf16[32,32], index: 6, kind: input, shape index: {}]   ;;  %s438_s1 = inlined_call_operand.vmem [shape: f32[16,32], index: 1, kind: input, shape index: {}]   ;;  %s439_s4 = inlined_call_operand.vmem [shape: bf16[32,96], index: 4, kind: input, shape index: {}]   ;;  %s440_s7 = inlined_call_operand.vmem [shape: f32[1,32], index: 7, kind: input, shape index: {}]   ;;  %s441_s2 = inlined_call_operand.vmem [shape: f32[1,32], index: 2, kind: input, shape index: {}]   ;;  %s442_s3 = inlined_call_operand.vmem [shape: f32[1,32], index: 3, kind: input, shape index: {}]   ;;  %s443_s5 = inlined_call_operand.vmem [shape: f32[1,96], index: 5, kind: input, shape index: {}]   ;;  %s444_s8 = inlined_call_operand.vmem [shape: f32[16,32], index: 8, kind: output, shape index: {0}]   ;;  %s445_s10 = inlined_call_operand.vmem [shape: f32[16,32], index: 10, kind: output, shape index: {2}]   ;;  %s446_s9 = inlined_call_operand.vmem [shape: f32[16,32], index: 9, kind: output, shape index: {1}]  }
   0x1   :  { %v33_v0 = vld [vmem:[%s436_s0] sm:$0xff]  ;;  %v34_v1 = vld [vmem:[%s436_s0 + $0x8] sm:$0xff]  ;;  %289 = vmatprep.subr.bf16.mxu1 %v310_v4  ;;  %293 = vmatprep.mubr.msk.bf16.mxu1 %vm311_vm1, %v310_v4 }
   0x2   :  { %v36_v2 = vsel %vm35_vm0, %v33_v0, 0.0  ;;  %v39_v3 = vsel %vm35_vm0, %v34_v1, 0.0  ;;  %v302_v5 = vld [vmem:[%s437_s6 + $0x8] sm:$0xff]   ;;  %281 = vmatprep.subr.bf16.mxu0 %v310_v4  ;;  %285 = vmatprep.mubr.msk.bf16.mxu0 %vm311_vm1, %v310_v4  ;;  %v303_v6 = vld [vmem:[%s437_s6] sm:$0xff]  }
   0x3   :  { %37 = vadd.xlane.f32.xlu0 %v36_v2  ;;  %290 = vmatpush3.bf16.msra.mxu1 %v302_v5  ;;  %v149_v7 = vld [vmem:[%s438_s1] sm:$0xff]  ;;  %v150_v8 = vld [vmem:[%s438_s1 + $0x8] sm:$0xff] }
   0x4   :  { %291 = vmatprep.subr.bf16.mxu1 %v310_v4  ;;  %v151_v9 = vpack.c.bf16 %v150_v8, %v149_v7  ;;  %v304_v20 = vld [vmem:[%s439_s4 + $0x8] sm:$0xff]   ;;  %v305_v21 = vld [vmem:[%s439_s4] sm:$0xff]  }
   0x5   :  { %282 = vmatpush3.bf16.msra.mxu0 %v304_v20  ;;  %v271_v22 = vld [vmem:[%s440_s7] ss:$0 sm:$0xff] }
   0x6   :  { %283 = vmatprep.subr.bf16.mxu0 %v310_v4  ;;  %v265_v37 = vld [vmem:[%s441_s2] ss:$0 sm:$0xff]  ;;  %s313_s2 = smov 64  }
   0x7   :  { %40 = vadd.xlane.f32.xlu0 %v39_v3  ;;  %292 = vmatpush3.bf16.msra.mxu1 %v303_v6  ;;  %v266_v41 = vld [vmem:[%s442_s3] ss:$0 sm:$0xff] }
   0x8   :  { %v267_v46 = vld [vmem:[%s443_s5] ss:$0 sm:$0xff] }
   0x9   :  { %284 = vmatpush3.bf16.msra.mxu0 %v305_v21 }
   0xa   :  { %294 = vmatmul.mubr.msk.bf16.vlgmr.msra.gmra.mxu1 %vm35_vm0, %v151_v9 }
  0x8c   :  { %v38_v10 = vpop.xlane.xlu0 %37 }
  0x8d   :  { %v43_v11 = vmul.f32 0.03125, %v38_v10 }
  0x8f   :  { %v45_v12 = vsub.f32 %v33_v0, %v43_v11 }
  0x90   :  { %v41_v13 = vpop.xlane.xlu0 %40 }
  0x91   :  { %v44_v14 = vmul.f32 0.03125, %v41_v13  ;;  %v47_v15 = vmul.f32 %v45_v12, %v45_v12 }
  0x93   :  { %v46_v16 = vsub.f32 %v34_v1, %v44_v14  ;;  %v49_v17 = vsel %vm35_vm0, %v47_v15, 0.0 }
  0x94   :  { %50 = vadd.xlane.f32.xlu1 %v49_v17 }
  0x95   :  { %v48_v18 = vmul.f32 %v46_v16, %v46_v16 }
  0x97   :  { %v52_v19 = vsel %vm35_vm0, %v48_v18, 0.0 }
  0x98   :  { %53 = vadd.xlane.f32.xlu1 %v52_v19 }
  0xca   :  { %v212_v23 = vpop.f32.mrf.mxu1 }
  0xcb   :  { %v213_v24 = vadd.f32 %v271_v22, %v212_v23 }
  0xcc   :  { %v295_v25 = vpop.f32.mrf.mxu1 }
  0xcd   :  { %225 = vrot.lane.b32.xlu0 %v213_v24, %s312_s28 }
  0xce   :  { %v215_v26 = vpop.f32.mrf.mxu1 }
  0xcf   :  { %v216_v27 = vadd.f32 %v271_v22, %v215_v26 }
  0xd0   :  { %v296_v28 = vpop.f32.mrf.mxu1 }
  0xd1   :  { %227 = vrot.lane.b32.xlu1 %v216_v27, %s312_s28 }
 0x11d   :  { %v51_v29 = vpop.xlane.xlu1 %50 }
 0x11e   :  { %v55_v30 = vmul.f32 0.03125, %v51_v29 }
 0x120   :  { %v57_v31 = vadd.f32 1e-12, %v55_v30 }
 0x121   :  { %v54_v32 = vpop.xlane.xlu1 %53 }
 0x122   :  { %306 = vrsqrt.f32 %v57_v31  ;;  %v56_v33 = vmul.f32 0.03125, %v54_v32 }
 0x124   :  { %v58_v34 = vadd.f32 1e-12, %v56_v33 }
 0x126   :  { %308 = vrsqrt.f32 %v58_v34 }
 0x12f   :  { %v307_v35 = vpop.eup %306 }
 0x130   :  { %v61_v36 = vmul.f32 %v307_v35, %v45_v12 }
 0x132   :  { %v70_v40 = vmul.f32 %v265_v37, %v61_v36 }
 0x133   :  { %v309_v38 = vpop.eup %308 }
 0x134   :  { %v62_v39 = vmul.f32 %v309_v38, %v46_v16  ;;  %v79_v43 = vadd.f32 %v266_v41, %v70_v40 }
 0x136   :  { %v71_v42 = vmul.f32 %v265_v37, %v62_v39 }
 0x138   :  { %v80_v44 = vadd.f32 %v266_v41, %v71_v42 }
 0x13a   :  { %v81_v45 = vpack.c.bf16 %v80_v44, %v79_v43 }
 0x13c   :  { %286 = vmatmul.mubr.msk.bf16.vlgmr.msra.gmra.mxu0 %vm35_vm0, %v81_v45 }
 0x13f   :  { %v226_v48 = vpop.permute.xlu0 %225 }
 0x143   :  { %v228_v55 = vpop.permute.xlu1 %227 }
 0x1fc   :  { %v142_v47 = vpop.f32.mrf.mxu0 }
 0x1fd   :  { %v143_v49 = vadd.f32 %v267_v46, %v142_v47 }
 0x1fe   :  { %v287_v50 = vpop.f32.mrf.mxu0 }
 0x1ff   :  { %v219_v51 = vmul.f32 0.35355338, %v143_v49  ;;  %v231_v52 = vadd.f32 %v226_v48, %v143_v49  ;;  %245 = vrot.lane.b32.xlu0 %v143_v49, %s313_s2 }
 0x200   :  { %v145_v53 = vpop.f32.mrf.mxu0 }
 0x201   :  { %221 = vst.msk [vmem:[%s444_s8] sm:$0xff] %vm35_vm0, %v219_v51  ;;  %v146_v54 = vadd.f32 %v267_v46, %v145_v53  ;;  %235 = vrot.lane.b32.xlu1 %v231_v52, %s314_s14 }
 0x202   :  { %v288_v56 = vpop.f32.mrf.mxu0 }
 0x203   :  { %v220_v57 = vmul.f32 0.35355338, %v146_v54  ;;  %v232_v58 = vadd.f32 %v228_v55, %v146_v54 }
 0x205   :  { %222 = vst.msk [vmem:[%s444_s8 + $0x8] sm:$0xff] %vm35_vm0, %v220_v57  ;;  %237 = vrot.lane.b32.xlu1 %v232_v58, %s314_s14 }
 0x209   :  { %247 = vrot.lane.b32.xlu1 %v146_v54, %s313_s2 }
 0x271   :  { %v246_v59 = vpop.permute.xlu0 %245 }
 0x272   :  { %251 = vst.msk [vmem:[%s445_s10] sm:$0xff] %vm35_vm0, %v246_v59 }
 0x273   :  { %v236_v60 = vpop.permute.xlu1 %235 }
 0x274   :  { %241 = vst.msk [vmem:[%s446_s9] sm:$0xff] %vm35_vm0, %v236_v60 }
 0x277   :  { %v238_v61 = vpop.permute.xlu1 %237 }
 0x278   :  { %242 = vst.msk [vmem:[%s446_s9 + $0x8] sm:$0xff] %vm35_vm0, %v238_v61 }
 0x27b   :  { %v248_v62 = vpop.permute.xlu1 %247 }
 0x27c   :  { %252 = vst.msk [vmem:[%s445_s10 + $0x8] sm:$0xff] %vm35_vm0, %v248_v62 }

</bundles_post_ra>
